<compile_context>
chip_gen: v7x
topology: tpu7x:2x2x1
jax: 0.10.0
libtpu: 0.0.40
codegen_flags: <defaults>
</compile_context>

<pallas_src>
import functools
import math

import jax
import jax.numpy as jnp
from jax.experimental import pallas as pl
from jax.experimental.pallas import tpu as pltpu


# ---------------------------------------------------------------------------
# Fused kernel: one batch element per grid step.
#   x_ref:     (N, C)    bf16
#   wqkv_ref:  (C, 3C)   bf16
#   wproj_ref: (C, C)    bf16
#   bproj_ref: (1, C)    f32
#   o_ref:     (N, C)    f32
#   merged_ref:(N, C)    f32 VMEM scratch (head-merged attention output)
# ---------------------------------------------------------------------------
def _fused_attention_kernel(x_ref, wqkv_ref, wproj_ref, bproj_ref, o_ref,
                            merged_ref, *, num_heads, scale):
    N, C = x_ref.shape
    H = num_heads
    D = C // H

    # --- QKV projection (qkv_bias=False): bf16 operands, f32 MXU accumulation ---
    qkv = jnp.dot(x_ref[...], wqkv_ref[...],
                  preferred_element_type=jnp.float32)            # (N, 3C) f32

    # Fold the softmax scale into q once (N*D elements), then cast MXU operands to bf16.
    q = (qkv[:, 0:C] * scale).astype(jnp.bfloat16)               # (N, C)
    k = qkv[:, C:2 * C].astype(jnp.bfloat16)                     # (N, C)
    v = qkv[:, 2 * C:3 * C].astype(jnp.bfloat16)                 # (N, C)

    # --- Per-head softmax attention (H is static -> unrolled at trace time) ---
    for h in range(H):
        qh = q[:, h * D:(h + 1) * D]                             # (N, D) bf16
        kh = k[:, h * D:(h + 1) * D]                             # (N, D) bf16
        vh = v[:, h * D:(h + 1) * D]                             # (N, D) bf16

        s = jnp.einsum("qd,kd->qk", qh, kh,
                       preferred_element_type=jnp.float32)       # (N, N) f32
        s_max = jnp.max(s, axis=-1, keepdims=True)
        p = jnp.exp(s - s_max)                                   # f32 softmax numerator
        denom = jnp.sum(p, axis=-1, keepdims=True)

        # Normalize after P@V: divides N*D elements, reciprocal on the EUP slot.
        oh = jnp.dot(p.astype(jnp.bfloat16), vh,
                     preferred_element_type=jnp.float32)         # (N, D) f32
        oh = oh * pl.reciprocal(denom, approx=True)

        # Merge heads into the lane-dense (N, C) slab (wrapper transposes eliminated).
        merged_ref[:, h * D:(h + 1) * D] = oh

    # --- Output projection (nn.Linear(dim, dim) with bias) ---
    out = jnp.dot(merged_ref[...].astype(jnp.bfloat16), wproj_ref[...],
                  preferred_element_type=jnp.float32)            # (N, C) f32
    o_ref[...] = (out + bproj_ref[...]).astype(o_ref.dtype)


# ---------------------------------------------------------------------------
# Full module forward
# ---------------------------------------------------------------------------
def attention_forward(x, w_qkv, w_proj, b_proj, *, num_heads):
    """x: (B, N, C) f32.  w_qkv: (C, 3C), w_proj: (C, C), b_proj: (C,).

    Matches PyTorch Attention.forward with qkv_bias=False, dropout p=0.0 (eval mode).
    PyTorch nn.Linear stores weights as (out, in); here they are pre-transposed to
    (in, out) so the kernel computes y = x @ w (+ b).
    """
    B, N, C = x.shape
    assert C % num_heads == 0, "dim should be divisible by num_heads"
    D = C // num_heads
    scale = D ** -0.5

    # Cast MXU operands to bf16 at the boundary (halves HBM/VMEM traffic); bias stays f32.
    x_bf = x.astype(jnp.bfloat16)
    wqkv_bf = w_qkv.astype(jnp.bfloat16)
    wproj_bf = w_proj.astype(jnp.bfloat16)
    b2 = b_proj.reshape(1, C).astype(jnp.float32)

    kernel = functools.partial(_fused_attention_kernel,
                               num_heads=num_heads, scale=scale)

    return pl.pallas_call(
        kernel,
        out_shape=jax.ShapeDtypeStruct((B, N, C), jnp.float32),
        grid=(B,),
        in_specs=[
            pl.BlockSpec((None, N, C), lambda b: (b, 0, 0)),   # x: one batch element
            pl.BlockSpec((C, 3 * C), lambda b: (0, 0)),        # w_qkv: full, replicated
            pl.BlockSpec((C, C), lambda b: (0, 0)),            # w_proj: full, replicated
            pl.BlockSpec((1, C), lambda b: (0, 0)),            # b_proj
        ],
        out_specs=pl.BlockSpec((None, N, C), lambda b: (b, 0, 0)),
        scratch_shapes=[pltpu.VMEM((N, C), jnp.float32)],      # head-merged attention out
        compiler_params=pltpu.CompilerParams(
            dimension_semantics=("parallel",)                  # B>=2 -> both v7x TCs busy
        ),
    )(x_bf, wqkv_bf, wproj_bf, b2)


# ---------------------------------------------------------------------------
# Pure-JAX f32 reference (mirrors the PyTorch forward exactly)
# ---------------------------------------------------------------------------
def _reference(x, w_qkv, w_proj, b_proj, *, num_heads):
    B, N, C = x.shape
    D = C // num_heads
    scale = D ** -0.5
    qkv = x @ w_qkv                                                     # (B, N, 3C)
    qkv = qkv.reshape(B, N, 3, num_heads, D).transpose(2, 0, 3, 1, 4)   # (3, B, H, N, D)
    q, k, v = qkv[0], qkv[1], qkv[2]
    attn = jnp.einsum("bhqd,bhkd->bhqk", q, k) * scale
    attn = jax.nn.softmax(attn, axis=-1)
    out = jnp.einsum("bhqk,bhkd->bhqd", attn, v)
    out = out.transpose(0, 2, 1, 3).reshape(B, N, C)
    return out @ w_proj + b_proj


if __name__ == "__main__":
    key = jax.random.PRNGKey(0)
    k_x, k_qkv, k_proj, k_b = jax.random.split(key, 4)

    B, N, C, H = 2, 16, 64, 8   # dim=64, num_heads=8 -> head_dim=8

    x = jax.random.normal(k_x, (B, N, C), dtype=jnp.float32)
    w_qkv = jax.random.normal(k_qkv, (C, 3 * C), dtype=jnp.float32) / math.sqrt(C)
    w_proj = jax.random.normal(k_proj, (C, C), dtype=jnp.float32) / math.sqrt(C)
    b_proj = jax.random.normal(k_b, (C,), dtype=jnp.float32) * 0.02

    out = attention_forward(x, w_qkv, w_proj, b_proj, num_heads=H)
    out = jax.block_until_ready(out)

    ref = _reference(x, w_qkv, w_proj, b_proj, num_heads=H)
    assert out.shape == (B, N, C), out.shape
    # Tolerance covers bf16 MXU operands (f32 accumulation) and approx reciprocal.
    assert jnp.allclose(out, ref, atol=5e-2, rtol=5e-2), float(
        jnp.max(jnp.abs(out - ref))
    )

    print("KERNEL_OK")
</pallas_src>

<mosaic_0001>
module attributes {stable_mosaic.version = 11 : i64} {
  func.func @_fused_attention_kernel(%arg0: i32, %arg1: memref<1x16x64xbf16, #tpu.memory_space<vmem>>, %arg2: memref<64x192xbf16, #tpu.memory_space<vmem>>, %arg3: memref<64x64xbf16, #tpu.memory_space<vmem>>, %arg4: memref<1x64xf32, #tpu.memory_space<vmem>>, %arg5: memref<1x16x64xf32, #tpu.memory_space<vmem>>, %arg6: memref<16x64xf32, #tpu.memory_space<vmem>>) attributes {dimension_semantics = [#tpu.dimension_semantics<parallel>], iteration_bounds = array<i64: 2>, scalar_prefetch = 0 : i64, scratch_operands = 1 : i64, tpu.core_type = #tpu.core_type<tc>, window_params = [{transform_indices = @transform_0, window_bounds = array<i64: 1, 16, 64>}, {pipeline_mode = #tpu.pipeline_mode<synchronous>, transform_indices = @transform_1, window_bounds = array<i64: 64, 192>}, {pipeline_mode = #tpu.pipeline_mode<synchronous>, transform_indices = @transform_2, window_bounds = array<i64: 64, 64>}, {pipeline_mode = #tpu.pipeline_mode<synchronous>, transform_indices = @transform_3, window_bounds = array<i64: 1, 64>}, {transform_indices = @transform_4, window_bounds = array<i64: 1, 16, 64>}]} {
    %c0 = arith.constant 0 : index
    %c0_0 = arith.constant 0 : index
    %c0_1 = arith.constant 0 : index
    %0 = vector.load %arg1[%c0, %c0_0, %c0_1] : memref<1x16x64xbf16, #tpu.memory_space<vmem>>, vector<1x16x64xbf16>
    %1 = vector.shape_cast %0 : vector<1x16x64xbf16> to vector<16x64xbf16>
    %c0_2 = arith.constant 0 : index
    %c0_3 = arith.constant 0 : index
    %2 = vector.load %arg2[%c0_2, %c0_3] : memref<64x192xbf16, #tpu.memory_space<vmem>>, vector<64x192xbf16>
    %cst = arith.constant dense<0.000000e+00> : vector<16x192xf32>
    %3 = tpu.matmul %1, %2, %cst {dimension_numbers = #tpu.dot_dimension_numbers<[1], [0], [0], [1], [0, 0, 1, 1], [], []>} : vector<16x64xbf16>, vector<64x192xbf16>, vector<16x192xf32> -> vector<16x192xf32>
    %4 = vector.extract_strided_slice %3 {offsets = [0, 0], sizes = [16, 64], strides = [1, 1]} : vector<16x192xf32> to vector<16x64xf32>
    %cst_4 = arith.constant 0.353553385 : f32
    %5 = vector.broadcast %cst_4 : f32 to vector<16x64xf32>
    %6 = arith.mulf %4, %5 : vector<16x64xf32>
    %7 = arith.truncf %6 : vector<16x64xf32> to vector<16x64xbf16>
    %8 = vector.extract_strided_slice %3 {offsets = [0, 64], sizes = [16, 64], strides = [1, 1]} : vector<16x192xf32> to vector<16x64xf32>
    %9 = arith.truncf %8 : vector<16x64xf32> to vector<16x64xbf16>
    %10 = vector.extract_strided_slice %3 {offsets = [0, 128], sizes = [16, 64], strides = [1, 1]} : vector<16x192xf32> to vector<16x64xf32>
    %11 = arith.truncf %10 : vector<16x64xf32> to vector<16x64xbf16>
    %12 = vector.extract_strided_slice %7 {offsets = [0, 0], sizes = [16, 8], strides = [1, 1]} : vector<16x64xbf16> to vector<16x8xbf16>
    %13 = vector.extract_strided_slice %9 {offsets = [0, 0], sizes = [16, 8], strides = [1, 1]} : vector<16x64xbf16> to vector<16x8xbf16>
    %14 = vector.extract_strided_slice %11 {offsets = [0, 0], sizes = [16, 8], strides = [1, 1]} : vector<16x64xbf16> to vector<16x8xbf16>
    "tpu.trace_start"() <{level = 10 : i32, message = "qd,kd->qk"}> : () -> ()
    %cst_5 = arith.constant dense<0.000000e+00> : vector<16x16xf32>
    %15 = tpu.matmul %12, %13, %cst_5 {dimension_numbers = #tpu.dot_dimension_numbers<[1], [1], [0], [0], [0, 0, 1, 0], [], []>} : vector<16x8xbf16>, vector<16x8xbf16>, vector<16x16xf32> -> vector<16x16xf32>
    "tpu.trace_stop"() : () -> ()
    %cst_6 = arith.constant dense<0xFF800000> : vector<16xf32>
    %16 = vector.multi_reduction <maximumf>, %15, %cst_6 [1] : vector<16x16xf32> to vector<16xf32>
    %17 = vector.shape_cast %16 : vector<16xf32> to vector<16x1xf32>
    %18 = vector.broadcast %17 : vector<16x1xf32> to vector<16x16xf32>
    %19 = arith.subf %15, %18 : vector<16x16xf32>
    %20 = math.exp %19 : vector<16x16xf32>
    %cst_7 = arith.constant dense<0.000000e+00> : vector<16xf32>
    %21 = vector.multi_reduction <add>, %20, %cst_7 [1] : vector<16x16xf32> to vector<16xf32>
    %22 = vector.shape_cast %21 : vector<16xf32> to vector<16x1xf32>
    %23 = arith.truncf %20 : vector<16x16xf32> to vector<16x16xbf16>
    %cst_8 = arith.constant dense<0.000000e+00> : vector<16x8xf32>
    %24 = tpu.matmul %23, %14, %cst_8 {dimension_numbers = #tpu.dot_dimension_numbers<[1], [0], [0], [1], [0, 0, 1, 1], [], []>} : vector<16x16xbf16>, vector<16x8xbf16>, vector<16x8xf32> -> vector<16x8xf32>
    %25 = tpu.reciprocal %22 {approx = true} : vector<16x1xf32> -> vector<16x1xf32>
    %26 = vector.broadcast %25 : vector<16x1xf32> to vector<16x8xf32>
    %27 = arith.mulf %24, %26 : vector<16x8xf32>
    %c0_9 = arith.constant 0 : index
    %c0_10 = arith.constant 0 : index
    %28 = vector.load %arg6[%c0_9, %c0_10] : memref<16x64xf32, #tpu.memory_space<vmem>>, vector<16x8xf32>
    tpu.vector_store %arg6[%c0_9, %c0_10], %27 {strides = array<i32>} : memref<16x64xf32, #tpu.memory_space<vmem>>, vector<16x8xf32>,
    %29 = vector.extract_strided_slice %7 {offsets = [0, 8], sizes = [16, 8], strides = [1, 1]} : vector<16x64xbf16> to vector<16x8xbf16>
    %30 = vector.extract_strided_slice %9 {offsets = [0, 8], sizes = [16, 8], strides = [1, 1]} : vector<16x64xbf16> to vector<16x8xbf16>
    %31 = vector.extract_strided_slice %11 {offsets = [0, 8], sizes = [16, 8], strides = [1, 1]} : vector<16x64xbf16> to vector<16x8xbf16>
    "tpu.trace_start"() <{level = 10 : i32, message = "qd,kd->qk"}> : () -> ()
    %cst_11 = arith.constant dense<0.000000e+00> : vector<16x16xf32>
    %32 = tpu.matmul %29, %30, %cst_11 {dimension_numbers = #tpu.dot_dimension_numbers<[1], [1], [0], [0], [0, 0, 1, 0], [], []>} : vector<16x8xbf16>, vector<16x8xbf16>, vector<16x16xf32> -> vector<16x16xf32>
    "tpu.trace_stop"() : () -> ()
    %cst_12 = arith.constant dense<0xFF800000> : vector<16xf32>
    %33 = vector.multi_reduction <maximumf>, %32, %cst_12 [1] : vector<16x16xf32> to vector<16xf32>
    %34 = vector.shape_cast %33 : vector<16xf32> to vector<16x1xf32>
    %35 = vector.broadcast %34 : vector<16x1xf32> to vector<16x16xf32>
    %36 = arith.subf %32, %35 : vector<16x16xf32>
    %37 = math.exp %36 : vector<16x16xf32>
    %cst_13 = arith.constant dense<0.000000e+00> : vector<16xf32>
    %38 = vector.multi_reduction <add>, %37, %cst_13 [1] : vector<16x16xf32> to vector<16xf32>
    %39 = vector.shape_cast %38 : vector<16xf32> to vector<16x1xf32>
    %40 = arith.truncf %37 : vector<16x16xf32> to vector<16x16xbf16>
    %cst_14 = arith.constant dense<0.000000e+00> : vector<16x8xf32>
    %41 = tpu.matmul %40, %31, %cst_14 {dimension_numbers = #tpu.dot_dimension_numbers<[1], [0], [0], [1], [0, 0, 1, 1], [], []>} : vector<16x16xbf16>, vector<16x8xbf16>, vector<16x8xf32> -> vector<16x8xf32>
    %42 = tpu.reciprocal %39 {approx = true} : vector<16x1xf32> -> vector<16x1xf32>
    %43 = vector.broadcast %42 : vector<16x1xf32> to vector<16x8xf32>
    %44 = arith.mulf %41, %43 : vector<16x8xf32>
    %c0_15 = arith.constant 0 : index
    %c8 = arith.constant 8 : index
    %45 = vector.load %arg6[%c0_15, %c8] : memref<16x64xf32, #tpu.memory_space<vmem>>, vector<16x8xf32>
    tpu.vector_store %arg6[%c0_15, %c8], %44 {strides = array<i32>} : memref<16x64xf32, #tpu.memory_space<vmem>>, vector<16x8xf32>,
    %46 = vector.extract_strided_slice %7 {offsets = [0, 16], sizes = [16, 8], strides = [1, 1]} : vector<16x64xbf16> to vector<16x8xbf16>
    %47 = vector.extract_strided_slice %9 {offsets = [0, 16], sizes = [16, 8], strides = [1, 1]} : vector<16x64xbf16> to vector<16x8xbf16>
    %48 = vector.extract_strided_slice %11 {offsets = [0, 16], sizes = [16, 8], strides = [1, 1]} : vector<16x64xbf16> to vector<16x8xbf16>
    "tpu.trace_start"() <{level = 10 : i32, message = "qd,kd->qk"}> : () -> ()
    %cst_16 = arith.constant dense<0.000000e+00> : vector<16x16xf32>
    %49 = tpu.matmul %46, %47, %cst_16 {dimension_numbers = #tpu.dot_dimension_numbers<[1], [1], [0], [0], [0, 0, 1, 0], [], []>} : vector<16x8xbf16>, vector<16x8xbf16>, vector<16x16xf32> -> vector<16x16xf32>
    "tpu.trace_stop"() : () -> ()
    %cst_17 = arith.constant dense<0xFF800000> : vector<16xf32>
    %50 = vector.multi_reduction <maximumf>, %49, %cst_17 [1] : vector<16x16xf32> to vector<16xf32>
    %51 = vector.shape_cast %50 : vector<16xf32> to vector<16x1xf32>
    %52 = vector.broadcast %51 : vector<16x1xf32> to vector<16x16xf32>
    %53 = arith.subf %49, %52 : vector<16x16xf32>
    %54 = math.exp %53 : vector<16x16xf32>
    %cst_18 = arith.constant dense<0.000000e+00> : vector<16xf32>
    %55 = vector.multi_reduction <add>, %54, %cst_18 [1] : vector<16x16xf32> to vector<16xf32>
    %56 = vector.shape_cast %55 : vector<16xf32> to vector<16x1xf32>
    %57 = arith.truncf %54 : vector<16x16xf32> to vector<16x16xbf16>
    %cst_19 = arith.constant dense<0.000000e+00> : vector<16x8xf32>
    %58 = tpu.matmul %57, %48, %cst_19 {dimension_numbers = #tpu.dot_dimension_numbers<[1], [0], [0], [1], [0, 0, 1, 1], [], []>} : vector<16x16xbf16>, vector<16x8xbf16>, vector<16x8xf32> -> vector<16x8xf32>
    %59 = tpu.reciprocal %56 {approx = true} : vector<16x1xf32> -> vector<16x1xf32>
    %60 = vector.broadcast %59 : vector<16x1xf32> to vector<16x8xf32>
    %61 = arith.mulf %58, %60 : vector<16x8xf32>
    %c0_20 = arith.constant 0 : index
    %c16 = arith.constant 16 : index
    %62 = vector.load %arg6[%c0_20, %c16] : memref<16x64xf32, #tpu.memory_space<vmem>>, vector<16x8xf32>
    tpu.vector_store %arg6[%c0_20, %c16], %61 {strides = array<i32>} : memref<16x64xf32, #tpu.memory_space<vmem>>, vector<16x8xf32>,
    %63 = vector.extract_strided_slice %7 {offsets = [0, 24], sizes = [16, 8], strides = [1, 1]} : vector<16x64xbf16> to vector<16x8xbf16>
    %64 = vector.extract_strided_slice %9 {offsets = [0, 24], sizes = [16, 8], strides = [1, 1]} : vector<16x64xbf16> to vector<16x8xbf16>
    %65 = vector.extract_strided_slice %11 {offsets = [0, 24], sizes = [16, 8], strides = [1, 1]} : vector<16x64xbf16> to vector<16x8xbf16>
    "tpu.trace_start"() <{level = 10 : i32, message = "qd,kd->qk"}> : () -> ()
    %cst_21 = arith.constant dense<0.000000e+00> : vector<16x16xf32>
    %66 = tpu.matmul %63, %64, %cst_21 {dimension_numbers = #tpu.dot_dimension_numbers<[1], [1], [0], [0], [0, 0, 1, 0], [], []>} : vector<16x8xbf16>, vector<16x8xbf16>, vector<16x16xf32> -> vector<16x16xf32>
    "tpu.trace_stop"() : () -> ()
    %cst_22 = arith.constant dense<0xFF800000> : vector<16xf32>
    %67 = vector.multi_reduction <maximumf>, %66, %cst_22 [1] : vector<16x16xf32> to vector<16xf32>
    %68 = vector.shape_cast %67 : vector<16xf32> to vector<16x1xf32>
    %69 = vector.broadcast %68 : vector<16x1xf32> to vector<16x16xf32>
    %70 = arith.subf %66, %69 : vector<16x16xf32>
    %71 = math.exp %70 : vector<16x16xf32>
    %cst_23 = arith.constant dense<0.000000e+00> : vector<16xf32>
    %72 = vector.multi_reduction <add>, %71, %cst_23 [1] : vector<16x16xf32> to vector<16xf32>
    %73 = vector.shape_cast %72 : vector<16xf32> to vector<16x1xf32>
    %74 = arith.truncf %71 : vector<16x16xf32> to vector<16x16xbf16>
    %cst_24 = arith.constant dense<0.000000e+00> : vector<16x8xf32>
    %75 = tpu.matmul %74, %65, %cst_24 {dimension_numbers = #tpu.dot_dimension_numbers<[1], [0], [0], [1], [0, 0, 1, 1], [], []>} : vector<16x16xbf16>, vector<16x8xbf16>, vector<16x8xf32> -> vector<16x8xf32>
    %76 = tpu.reciprocal %73 {approx = true} : vector<16x1xf32> -> vector<16x1xf32>
    %77 = vector.broadcast %76 : vector<16x1xf32> to vector<16x8xf32>
    %78 = arith.mulf %75, %77 : vector<16x8xf32>
    %c0_25 = arith.constant 0 : index
    %c24 = arith.constant 24 : index
    %79 = vector.load %arg6[%c0_25, %c24] : memref<16x64xf32, #tpu.memory_space<vmem>>, vector<16x8xf32>
    tpu.vector_store %arg6[%c0_25, %c24], %78 {strides = array<i32>} : memref<16x64xf32, #tpu.memory_space<vmem>>, vector<16x8xf32>,
    %80 = vector.extract_strided_slice %7 {offsets = [0, 32], sizes = [16, 8], strides = [1, 1]} : vector<16x64xbf16> to vector<16x8xbf16>
    %81 = vector.extract_strided_slice %9 {offsets = [0, 32], sizes = [16, 8], strides = [1, 1]} : vector<16x64xbf16> to vector<16x8xbf16>
    %82 = vector.extract_strided_slice %11 {offsets = [0, 32], sizes = [16, 8], strides = [1, 1]} : vector<16x64xbf16> to vector<16x8xbf16>
    "tpu.trace_start"() <{level = 10 : i32, message = "qd,kd->qk"}> : () -> ()
    %cst_26 = arith.constant dense<0.000000e+00> : vector<16x16xf32>
    %83 = tpu.matmul %80, %81, %cst_26 {dimension_numbers = #tpu.dot_dimension_numbers<[1], [1], [0], [0], [0, 0, 1, 0], [], []>} : vector<16x8xbf16>, vector<16x8xbf16>, vector<16x16xf32> -> vector<16x16xf32>
    "tpu.trace_stop"() : () -> ()
    %cst_27 = arith.constant dense<0xFF800000> : vector<16xf32>
    %84 = vector.multi_reduction <maximumf>, %83, %cst_27 [1] : vector<16x16xf32> to vector<16xf32>
    %85 = vector.shape_cast %84 : vector<16xf32> to vector<16x1xf32>
    %86 = vector.broadcast %85 : vector<16x1xf32> to vector<16x16xf32>
    %87 = arith.subf %83, %86 : vector<16x16xf32>
    %88 = math.exp %87 : vector<16x16xf32>
    %cst_28 = arith.constant dense<0.000000e+00> : vector<16xf32>
    %89 = vector.multi_reduction <add>, %88, %cst_28 [1] : vector<16x16xf32> to vector<16xf32>
    %90 = vector.shape_cast %89 : vector<16xf32> to vector<16x1xf32>
    %91 = arith.truncf %88 : vector<16x16xf32> to vector<16x16xbf16>
    %cst_29 = arith.constant dense<0.000000e+00> : vector<16x8xf32>
    %92 = tpu.matmul %91, %82, %cst_29 {dimension_numbers = #tpu.dot_dimension_numbers<[1], [0], [0], [1], [0, 0, 1, 1], [], []>} : vector<16x16xbf16>, vector<16x8xbf16>, vector<16x8xf32> -> vector<16x8xf32>
    %93 = tpu.reciprocal %90 {approx = true} : vector<16x1xf32> -> vector<16x1xf32>
    %94 = vector.broadcast %93 : vector<16x1xf32> to vector<16x8xf32>
    %95 = arith.mulf %92, %94 : vector<16x8xf32>
    %c0_30 = arith.constant 0 : index
    %c32 = arith.constant 32 : index
    %96 = vector.load %arg6[%c0_30, %c32] : memref<16x64xf32, #tpu.memory_space<vmem>>, vector<16x8xf32>
    tpu.vector_store %arg6[%c0_30, %c32], %95 {strides = array<i32>} : memref<16x64xf32, #tpu.memory_space<vmem>>, vector<16x8xf32>,
    %97 = vector.extract_strided_slice %7 {offsets = [0, 40], sizes = [16, 8], strides = [1, 1]} : vector<16x64xbf16> to vector<16x8xbf16>
    %98 = vector.extract_strided_slice %9 {offsets = [0, 40], sizes = [16, 8], strides = [1, 1]} : vector<16x64xbf16> to vector<16x8xbf16>
    %99 = vector.extract_strided_slice %11 {offsets = [0, 40], sizes = [16, 8], strides = [1, 1]} : vector<16x64xbf16> to vector<16x8xbf16>
    "tpu.trace_start"() <{level = 10 : i32, message = "qd,kd->qk"}> : () -> ()
    %cst_31 = arith.constant dense<0.000000e+00> : vector<16x16xf32>
    %100 = tpu.matmul %97, %98, %cst_31 {dimension_numbers = #tpu.dot_dimension_numbers<[1], [1], [0], [0], [0, 0, 1, 0], [], []>} : vector<16x8xbf16>, vector<16x8xbf16>, vector<16x16xf32> -> vector<16x16xf32>
    "tpu.trace_stop"() : () -> ()
    %cst_32 = arith.constant dense<0xFF800000> : vector<16xf32>
    %101 = vector.multi_reduction <maximumf>, %100, %cst_32 [1] : vector<16x16xf32> to vector<16xf32>
    %102 = vector.shape_cast %101 : vector<16xf32> to vector<16x1xf32>
    %103 = vector.broadcast %102 : vector<16x1xf32> to vector<16x16xf32>
    %104 = arith.subf %100, %103 : vector<16x16xf32>
    %105 = math.exp %104 : vector<16x16xf32>
    %cst_33 = arith.constant dense<0.000000e+00> : vector<16xf32>
    %106 = vector.multi_reduction <add>, %105, %cst_33 [1] : vector<16x16xf32> to vector<16xf32>
    %107 = vector.shape_cast %106 : vector<16xf32> to vector<16x1xf32>
    %108 = arith.truncf %105 : vector<16x16xf32> to vector<16x16xbf16>
    %cst_34 = arith.constant dense<0.000000e+00> : vector<16x8xf32>
    %109 = tpu.matmul %108, %99, %cst_34 {dimension_numbers = #tpu.dot_dimension_numbers<[1], [0], [0], [1], [0, 0, 1, 1], [], []>} : vector<16x16xbf16>, vector<16x8xbf16>, vector<16x8xf32> -> vector<16x8xf32>
    %110 = tpu.reciprocal %107 {approx = true} : vector<16x1xf32> -> vector<16x1xf32>
    %111 = vector.broadcast %110 : vector<16x1xf32> to vector<16x8xf32>
    %112 = arith.mulf %109, %111 : vector<16x8xf32>
    %c0_35 = arith.constant 0 : index
    %c40 = arith.constant 40 : index
    %113 = vector.load %arg6[%c0_35, %c40] : memref<16x64xf32, #tpu.memory_space<vmem>>, vector<16x8xf32>
    tpu.vector_store %arg6[%c0_35, %c40], %112 {strides = array<i32>} : memref<16x64xf32, #tpu.memory_space<vmem>>, vector<16x8xf32>,
    %114 = vector.extract_strided_slice %7 {offsets = [0, 48], sizes = [16, 8], strides = [1, 1]} : vector<16x64xbf16> to vector<16x8xbf16>
    %115 = vector.extract_strided_slice %9 {offsets = [0, 48], sizes = [16, 8], strides = [1, 1]} : vector<16x64xbf16> to vector<16x8xbf16>
    %116 = vector.extract_strided_slice %11 {offsets = [0, 48], sizes = [16, 8], strides = [1, 1]} : vector<16x64xbf16> to vector<16x8xbf16>
    "tpu.trace_start"() <{level = 10 : i32, message = "qd,kd->qk"}> : () -> ()
    %cst_36 = arith.constant dense<0.000000e+00> : vector<16x16xf32>
    %117 = tpu.matmul %114, %115, %cst_36 {dimension_numbers = #tpu.dot_dimension_numbers<[1], [1], [0], [0], [0, 0, 1, 0], [], []>} : vector<16x8xbf16>, vector<16x8xbf16>, vector<16x16xf32> -> vector<16x16xf32>
    "tpu.trace_stop"() : () -> ()
    %cst_37 = arith.constant dense<0xFF800000> : vector<16xf32>
    %118 = vector.multi_reduction <maximumf>, %117, %cst_37 [1] : vector<16x16xf32> to vector<16xf32>
    %119 = vector.shape_cast %118 : vector<16xf32> to vector<16x1xf32>
    %120 = vector.broadcast %119 : vector<16x1xf32> to vector<16x16xf32>
    %121 = arith.subf %117, %120 : vector<16x16xf32>
    %122 = math.exp %121 : vector<16x16xf32>
    %cst_38 = arith.constant dense<0.000000e+00> : vector<16xf32>
    %123 = vector.multi_reduction <add>, %122, %cst_38 [1] : vector<16x16xf32> to vector<16xf32>
    %124 = vector.shape_cast %123 : vector<16xf32> to vector<16x1xf32>
    %125 = arith.truncf %122 : vector<16x16xf32> to vector<16x16xbf16>
    %cst_39 = arith.constant dense<0.000000e+00> : vector<16x8xf32>
    %126 = tpu.matmul %125, %116, %cst_39 {dimension_numbers = #tpu.dot_dimension_numbers<[1], [0], [0], [1], [0, 0, 1, 1], [], []>} : vector<16x16xbf16>, vector<16x8xbf16>, vector<16x8xf32> -> vector<16x8xf32>
    %127 = tpu.reciprocal %124 {approx = true} : vector<16x1xf32> -> vector<16x1xf32>
    %128 = vector.broadcast %127 : vector<16x1xf32> to vector<16x8xf32>
    %129 = arith.mulf %126, %128 : vector<16x8xf32>
    %c0_40 = arith.constant 0 : index
    %c48 = arith.constant 48 : index
    %130 = vector.load %arg6[%c0_40, %c48] : memref<16x64xf32, #tpu.memory_space<vmem>>, vector<16x8xf32>
    tpu.vector_store %arg6[%c0_40, %c48], %129 {strides = array<i32>} : memref<16x64xf32, #tpu.memory_space<vmem>>, vector<16x8xf32>,
    %131 = vector.extract_strided_slice %7 {offsets = [0, 56], sizes = [16, 8], strides = [1, 1]} : vector<16x64xbf16> to vector<16x8xbf16>
    %132 = vector.extract_strided_slice %9 {offsets = [0, 56], sizes = [16, 8], strides = [1, 1]} : vector<16x64xbf16> to vector<16x8xbf16>
    %133 = vector.extract_strided_slice %11 {offsets = [0, 56], sizes = [16, 8], strides = [1, 1]} : vector<16x64xbf16> to vector<16x8xbf16>
    "tpu.trace_start"() <{level = 10 : i32, message = "qd,kd->qk"}> : () -> ()
    %cst_41 = arith.constant dense<0.000000e+00> : vector<16x16xf32>
    %134 = tpu.matmul %131, %132, %cst_41 {dimension_numbers = #tpu.dot_dimension_numbers<[1], [1], [0], [0], [0, 0, 1, 0], [], []>} : vector<16x8xbf16>, vector<16x8xbf16>, vector<16x16xf32> -> vector<16x16xf32>
    "tpu.trace_stop"() : () -> ()
    %cst_42 = arith.constant dense<0xFF800000> : vector<16xf32>
    %135 = vector.multi_reduction <maximumf>, %134, %cst_42 [1] : vector<16x16xf32> to vector<16xf32>
    %136 = vector.shape_cast %135 : vector<16xf32> to vector<16x1xf32>
    %137 = vector.broadcast %136 : vector<16x1xf32> to vector<16x16xf32>
    %138 = arith.subf %134, %137 : vector<16x16xf32>
    %139 = math.exp %138 : vector<16x16xf32>
    %cst_43 = arith.constant dense<0.000000e+00> : vector<16xf32>
    %140 = vector.multi_reduction <add>, %139, %cst_43 [1] : vector<16x16xf32> to vector<16xf32>
    %141 = vector.shape_cast %140 : vector<16xf32> to vector<16x1xf32>
    %142 = arith.truncf %139 : vector<16x16xf32> to vector<16x16xbf16>
    %cst_44 = arith.constant dense<0.000000e+00> : vector<16x8xf32>
    %143 = tpu.matmul %142, %133, %cst_44 {dimension_numbers = #tpu.dot_dimension_numbers<[1], [0], [0], [1], [0, 0, 1, 1], [], []>} : vector<16x16xbf16>, vector<16x8xbf16>, vector<16x8xf32> -> vector<16x8xf32>
    %144 = tpu.reciprocal %141 {approx = true} : vector<16x1xf32> -> vector<16x1xf32>
    %145 = vector.broadcast %144 : vector<16x1xf32> to vector<16x8xf32>
    %146 = arith.mulf %143, %145 : vector<16x8xf32>
    %c0_45 = arith.constant 0 : index
    %c56 = arith.constant 56 : index
    %147 = vector.load %arg6[%c0_45, %c56] : memref<16x64xf32, #tpu.memory_space<vmem>>, vector<16x8xf32>
    tpu.vector_store %arg6[%c0_45, %c56], %146 {strides = array<i32>} : memref<16x64xf32, #tpu.memory_space<vmem>>, vector<16x8xf32>,
    %c0_46 = arith.constant 0 : index
    %c0_47 = arith.constant 0 : index
    %148 = vector.load %arg6[%c0_46, %c0_47] : memref<16x64xf32, #tpu.memory_space<vmem>>, vector<16x64xf32>
    %149 = arith.truncf %148 : vector<16x64xf32> to vector<16x64xbf16>
    %c0_48 = arith.constant 0 : index
    %c0_49 = arith.constant 0 : index
    %150 = vector.load %arg3[%c0_48, %c0_49] : memref<64x64xbf16, #tpu.memory_space<vmem>>, vector<64x64xbf16>
    %cst_50 = arith.constant dense<0.000000e+00> : vector<16x64xf32>
    %151 = tpu.matmul %149, %150, %cst_50 {dimension_numbers = #tpu.dot_dimension_numbers<[1], [0], [0], [1], [0, 0, 1, 1], [], []>} : vector<16x64xbf16>, vector<64x64xbf16>, vector<16x64xf32> -> vector<16x64xf32>
    %c0_51 = arith.constant 0 : index
    %c0_52 = arith.constant 0 : index
    %152 = vector.load %arg4[%c0_51, %c0_52] : memref<1x64xf32, #tpu.memory_space<vmem>>, vector<1x64xf32>
    %153 = vector.broadcast %152 : vector<1x64xf32> to vector<16x64xf32>
    %154 = arith.addf %151, %153 : vector<16x64xf32>
    %c0_53 = arith.constant 0 : index
    %c0_54 = arith.constant 0 : index
    %c0_55 = arith.constant 0 : index
    %155 = vector.load %arg5[%c0_53, %c0_54, %c0_55] : memref<1x16x64xf32, #tpu.memory_space<vmem>>, vector<1x16x64xf32>
    %156 = vector.shape_cast %155 : vector<1x16x64xf32> to vector<16x64xf32>
    %157 = vector.shape_cast %154 : vector<16x64xf32> to vector<1x16x64xf32>
    tpu.vector_store %arg5[%c0_53, %c0_54, %c0_55], %157 {strides = array<i32>} : memref<1x16x64xf32, #tpu.memory_space<vmem>>, vector<1x16x64xf32>,
    return
  }
  func.func @transform_0(%arg0: i32) -> (i32, i32, i32) {
    %c0_i32 = arith.constant 0 : i32
    %c0_i32_0 = arith.constant 0 : i32
    %c0_i32_1 = arith.constant 0 : i32
    return %arg0, %c0_i32, %c0_i32_0 : i32, i32, i32
  }
  func.func @transform_1(%arg0: i32) -> (i32, i32) {
    %c0_i32 = arith.constant 0 : i32
    %c0_i32_0 = arith.constant 0 : i32
    %c0_i32_1 = arith.constant 0 : i32
    return %c0_i32, %c0_i32_0 : i32, i32
  }
  func.func @transform_2(%arg0: i32) -> (i32, i32) {
    %c0_i32 = arith.constant 0 : i32
    %c0_i32_0 = arith.constant 0 : i32
    %c0_i32_1 = arith.constant 0 : i32
    return %c0_i32, %c0_i32_0 : i32, i32
  }
  func.func @transform_3(%arg0: i32) -> (i32, i32) {
    %c0_i32 = arith.constant 0 : i32
    %c0_i32_0 = arith.constant 0 : i32
    %c0_i32_1 = arith.constant 0 : i32
    return %c0_i32, %c0_i32_0 : i32, i32
  }
  func.func @transform_4(%arg0: i32) -> (i32, i32, i32) {
    %c0_i32 = arith.constant 0 : i32
    %c0_i32_0 = arith.constant 0 : i32
    %c0_i32_1 = arith.constant 0 : i32
    return %arg0, %c0_i32, %c0_i32_0 : i32, i32, i32
  }
}

</mosaic_0001>

<bundles_post_ra>
// kernel: tpu_custom_call.1
= control target key start
LH: loop header
LB: loop body
LE: loop exit
PB: predicated region body
PF: predicated region fallthrough
CT: control target
= control target key end

     0   :  { %9 = vsyncpa [#allocation4], 0  ;;  %s2662_s0 = inlined_call_operand.hbm [shape: bf16[2,16,64], index: 0, kind: input, shape index: {}]   ;;  %s2663_s1 = inlined_call_operand.hbm [shape: bf16[64,192], index: 1, kind: input, shape index: {}]   ;;  %s2664_s2 = inlined_call_operand.hbm [shape: bf16[64,64], index: 2, kind: input, shape index: {}]   ;;  %s2665_s3 = inlined_call_operand.vmem [shape: f32[1,64], index: 3, kind: input, shape index: {}]   ;;  %s2666_s4 = inlined_call_operand.hbm [shape: f32[2,16,64], index: 4, kind: output, shape index: {}]  }
   0x1   :  { %11 = vsyncpa [#allocation4 + $0x1], 0 }
   0x2   :  { %12 = vsyncpa [#allocation7], 0 }
   0x3   :  { %13 = vsyncpa [#allocation5], 0 }
   0x4   :  { %15 = vsyncpa [#allocation5 + $0x1], 0  ;;  %s2172_s15 = smov 0   ;;  %s2174_s16 = smov 0  }
   0x5   :  { %s2176_s17 = smov 0   ;;  %s2178_s18 = smov 0  }
   0x6 LB: > { %s2193_s19 = sadd.s32 4294967295, %s2118_s18   ;;  %s1594_s20 = sadd.s32 4294967294, %s2118_s18   ;;  %s2118_s18 = sphi %s2178_s18, %s2686_s18   ;;  %s2114_s17 = sphi %s2176_s17, %s2685_s17   ;;  %s2110_s16 = sphi %s2174_s16, %s2684_s16   ;;  %s2106_s15 = sphi %s2172_s15, %s2683_s15  }
   0x7   : > { %p41_p0 = scmp.ne.s32.totalorder %s2110_s16, %s2106_s15  ;;  %p2667_p1 = scmp.eq.s32.totalorder %s2193_s19, 0 }
   0x8   : > { %p134_p3 = scmp.eq.s32.totalorder %s1594_s20, 1  ;;  %p1595_p5 = scmp.ge.s32.totalorder %s2118_s18, 1 }
   0x9   : > { %p2202_p4 = por %p2667_p1, %p41_p0  ;;  %p141_p7 = scmp.lt.s32.totalorder %s2118_s18, 3 }
   0xa   : > { %p2207_p6 = por %p134_p3, %p41_p0  ;;  %s2120_s24 = smov [#allocation6]  }
   0xb   : > { %s2670_s21 = scalar_select %p2202_p4, 1, 0 }
   0xc   : > { %s2671_s22 = scalar_select %p2207_p6, 1, 0 }
   0xd   : > { %p2212_p8 = pnand %p1595_p5, %p141_p7  ;;  %s153_s25 = sshll.u32 %s2120_s24, 4  ;;  %s2216_s25 = int_to_ptr.vmem [resolvable:$true] %s153_s25 }
   0xe   : > { %s2121_s27 = smov [#allocation8]   ;;  %s1962_s5 = scalar_lea.hbm %s2663_s1, 1024 }
   0xf   : > { %p1803_p9 = pneg %p2212_p8  ;;  %s166_s28 = sshll.u32 %s2121_s27, 4  ;;  %s2227_s28 = int_to_ptr.vmem [resolvable:$true] %s166_s28 }
  0x10   : > { %p1963_p12 = scmp.ne.s32.totalorder %s2663_s1, %s1962_s5  ;;  %p1969_p5 = scmp.lt.u32.totalorder %s1962_s5, %s2663_s1 }
  0x11   : > { %p2223_p11 = pnand %p1803_p9, %p2667_p1 }
  0x13   : > { %p1964_p13 = pneg %p2223_p11 }
  0x15   : > { %p1965_p0 = pnand %p1964_p13, %p1963_p12 }
  0x17   : > { %p1966_p3 = pneg %p1965_p0 }
  0x19   : > { %p1971_p7 = pnand %p1969_p5, %p1966_p3 }
  0x1b   : > { %1974 = shalt.err (!%p1971_p7)
}
  0x1c   : > { %s1975_s10 = scalar_lea.vmem %s2216_s25, 1024  ;;  %p1983_p2 = scmp.lt.s32.totalorder %s2216_s25, %s2216_s25 }
  0x1d   : > { %p1976_p9 = scmp.ne.s32.totalorder %s2216_s25, %s1975_s10  ;;  %p1984_p12 = scmp.lt.s32.totalorder %s1975_s10, %s1975_s10 }
  0x1f   : > { %p1978_p10 = pnand %p1976_p9, %p1964_p13  ;;  %p1985_p0 = por %p1984_p12, %p1983_p2 }
  0x21   : > { %p1979_p1 = pneg %p1978_p10 }
  0x23   : > { %p1986_p6 = pnand %p1985_p0, %p1979_p1 }
  0x25   : > { %1989 = shalt.err (!%p1986_p6)
}
  0x26   : > { %s2122_s11 = smov 128   ;;  %s2123_s12 = smov 8  }
  0x27   : > { %1806 = dma.hbm_to_vmem [thread:$0]  (!%p2223_p11), %s2663_s1, 1024, %s2216_s25, [#allocation7], %s2122_s11, %s2122_s11, %s2123_s12  }
  0x28   : > { %s1990_s27 = scalar_lea.hbm %s2664_s2, 512 }
  0x29   : > { %p1991_p2 = scmp.ne.s32.totalorder %s2664_s2, %s1990_s27  ;;  %p1997_p10 = scmp.lt.u32.totalorder %s1990_s27, %s2664_s2 }
  0x2b   : > { %p1993_p1 = pnand %p1991_p2, %p1964_p13 }
  0x2d   : > { %p1994_p6 = pneg %p1993_p1 }
  0x2f   : > { %p1999_p3 = pnand %p1997_p10, %p1994_p6 }
  0x31   : > { %2002 = shalt.err (!%p1999_p3)
}
  0x32   : > { %s2003_s25 = scalar_lea.vmem %s2227_s28, 512  ;;  %p2011_p12 = scmp.lt.s32.totalorder %s2227_s28, %s2227_s28 }
  0x33   : > { %p2004_p5 = scmp.ne.s32.totalorder %s2227_s28, %s2003_s25  ;;  %p2012_p0 = scmp.lt.s32.totalorder %s2003_s25, %s2003_s25 }
  0x35   : > { %p2006_p7 = pnand %p2004_p5, %p1964_p13  ;;  %p2013_p2 = por %p2012_p0, %p2011_p12 }
  0x37   : > { %p2007_p9 = pneg %p2006_p7 }
  0x39   : > { %p2014_p1 = pnand %p2013_p2, %p2007_p9 }
  0x3b   : > { %2017 = shalt.err (!%p2014_p1)
}
  0x3c   : > { %s2124_s7 = smov 64   ;;  %s2125_s8 = smov 4  }
  0x3d   : > { %1809 = dma.hbm_to_vmem [thread:$0]  (!%p2223_p11), %s2664_s2, 512, %s2227_s28, [#allocation7], %s2124_s7, %s2124_s7, %s2125_s8  }
  0x3e   : > { %s2285_s11 = sadd.s32 1, %s2118_s18   ;;  %s28_s13 = sadd.s32 1, %s2114_s17 }
  0x3f   : > { %s25_s12 = ssub.s32 %s2118_s18, %s2285_s11  ;;  %p35_p6 = scmp.ne.s32.totalorder %s2114_s17, %s2110_s16 }
  0x40   : > { %p26_p13 = scmp.eq.s32.totalorder %s25_s12, 0  ;;  %p36_p10 = scmp.eq.s32.totalorder %s2118_s18, 0 }
  0x41   : > { %p2674_p5 = scmp.eq.s32.totalorder %s2193_s19, 1  ;;  %p1820_p9 = scmp.lt.s32.totalorder %s2118_s18, 2 }
  0x42   : > { %s2294_s14 = scalar_select %p26_p13, %s2114_s17, %s28_s13  }
  0x43   : > { %p37_p3 = por %p36_p10, %p35_p6  ;;  %p2298_p7 = por %p2674_p5, %p35_p6 }
  0x44   : > { %s183_s20 = sand.u32 1, %s2114_s17   ;;  %s1644_s28 = sshll.u32 %s2118_s18, 7 }
  0x45   : > { %s2675_s26 = scalar_select %p2298_p7, 1, 0 }
  0x46   : > { %s1599_s24 = sshll.u32 %s183_s20, 3  ;;  %s2308_s30 = scalar_lea.hbm %s2662_s0, %s1644_s28 }
  0x47   : > { %s187_s5 = scalar_lea.vmem [#allocation3], %s1599_s24  ;;  %p2312_p11 = pnand %p1820_p9, %p37_p3 }
  0x48   : > { %s194_s6 = sshll.u32 %s187_s5, 4  ;;  %s2316_s9 = scalar_lea.sflag [#allocation4], %s183_s20  ;;  %s2310_s6 = int_to_ptr.vmem [resolvable:$true] %s194_s6 }
  0x49   : > { %s2018_s10 = scalar_lea.hbm %s2308_s30, 128  ;;  %p2020_p0 = pneg %p2312_p11 }
  0x4a   : > { %p2019_p12 = scmp.ne.s32.totalorder %s2308_s30, %s2018_s10  ;;  %s2023_s24 = scalar_lea.hbm %s2662_s0, 256 }
  0x4b   : > { %p2024_p13 = scmp.lt.u32.totalorder %s2308_s30, %s2662_s0  ;;  %p2025_p6 = scmp.lt.u32.totalorder %s2023_s24, %s2018_s10 }
  0x4c   : > { %p2021_p2 = pnand %p2020_p0, %p2019_p12  ;;  %p2027_p3 = scmp.lt.u32.totalorder %s2018_s10, %s2308_s30 }
  0x4d   : > { %p2026_p10 = por %p2025_p6, %p2024_p13 }
  0x4e   : > { %p2022_p1 = pneg %p2021_p2 }
  0x4f   : > { %p2028_p5 = por %p2027_p3, %p2026_p10 }
  0x51   : > { %p2029_p9 = pnand %p2028_p5, %p2022_p1 }
  0x53   : > { %2032 = shalt.err (!%p2029_p9)
}
  0x54   : > { %s2033_s20 = scalar_lea.vmem %s2310_s6, 128  ;;  %s2126_s29 = smov [#allocation3]  }
  0x55   : > { %p2034_p12 = scmp.ne.s32.totalorder %s2310_s6, %s2033_s20  ;;  %s2038_s5 = sshll.u32 %s2126_s29, 4  ;;  %s2039_s5 = int_to_ptr.vmem [resolvable:$false] %s2038_s5 }
  0x56   : > { %s2040_s12 = scalar_lea.vmem %s2039_s5, 256  ;;  %p2041_p4 = scmp.lt.s32.totalorder %s2310_s6, %s2039_s5 }
  0x57   : > { %p2036_p2 = pnand %p2034_p12, %p2020_p0  ;;  %p2042_p13 = scmp.lt.s32.totalorder %s2040_s12, %s2033_s20 }
  0x59   : > { %p2037_p7 = pneg %p2036_p2  ;;  %p2043_p6 = por %p2042_p13, %p2041_p4 }
  0x5b   : > { %p2044_p10 = pnand %p2043_p6, %p2037_p7 }
  0x5d   : > { %2047 = shalt.err (!%p2044_p10)
}
  0x5e   : > { %1813 = dma.hbm_to_vmem [thread:$0]  (!%p2312_p11), %s2308_s30, 128, %s2310_s6, %s2316_s9, %s2124_s7, %s2124_s7, %s2125_s8  }
  0x5f   : > { %206 = sbr.rel (%p2212_p8) target bundleno = 1884 (0x75c), region = 36  ;;  %s2350_s10 = sand.u32 (!%p2212_p8), 1, %s2110_s16  }
  0x60   : > { %s1603_s13 = sshll.u32 (!%p2212_p8), %s2350_s10, 3  ;;  %s209_s24 = scalar_lea.sflag (!%p2212_p8), [#allocation4], %s2350_s10 }
  0x61   : > { %s212_s28 = scalar_lea.vmem (!%p2212_p8), [#allocation3], %s1603_s13  ;;  %p2677_p4 = scmp.ne.s32.totalorder (!%p2212_p8), %s2670_s21, 0 }
  0x66   : > { %2093 = dma.done.wait (%p2677_p4), %s209_s24, 128  }
  0x67   : > { %2095 = vsyncadd (%p2677_p4), %s209_s24, 4294967168  ;;  %p2678_p7 = scmp.eq.s32.totalorder %s2193_s19, 0 }
  0x69   : > { %2097 = dma.done.wait (%p2678_p7), [#allocation7], 1536   ;;  %p2679_p11 = pmov %p2678_p7 }
  0x6a   : > { %v2127_v0 = vmov 0   ;;  %v1881_v1 = vld [vmem:[#allocation6 + $0x4] ss:$8 sps:$4 sm:$0xff]   ;;  %v1883_v2 = vld [vmem:[#allocation6] ss:$8 sps:$4 sm:$0xff]   ;;  %v1893_v9 = vld [vmem:[%s212_s28] sm:$0xff]  }
  0x6b   : > { %2099 = vsyncadd (%p2679_p11), [#allocation7], 4294965760  ;;  %337 = vmatprep.mubr.bf16.mxu0 %v2127_v0  ;;  %305 = vmatprep.subr.bf16.mxu0 %v1881_v1  ;;  %v1884_v3 = vld [vmem:[#allocation6 + $0x14] ss:$8 sps:$4 sm:$0xff]   ;;  %v1886_v4 = vld [vmem:[#allocation6 + $0x10] ss:$8 sps:$4 sm:$0xff]  }
  0x6c   : > { %306 = vmatpush1.bf16.msra.mxu0 %v1883_v2  ;;  %v1887_v5 = vld [vmem:[#allocation6 + $0x24] ss:$8 sps:$4 sm:$0xff]   ;;  %v1889_v6 = vld [vmem:[#allocation6 + $0x20] ss:$8 sps:$4 sm:$0xff]   ;;  %v1890_v7 = vld [vmem:[#allocation6 + $0x34] ss:$8 sps:$4 sm:$0xff]  }
  0x6d   : > { %307 = vmatprep.subr.bf16.mxu0 %v1884_v3  ;;  %v1892_v8 = vld [vmem:[#allocation6 + $0x30] ss:$8 sps:$4 sm:$0xff]   ;;  %vm301_vm0 = vcmask 523264   ;;  %v2128_v10 = vmov 0.0   ;;  %vm2129_vm1 = vmmov 0   ;;  %s2130_s21 = smov 56  }
  0x6e   : > { %1683 = vmatprep.subr.bf16.mxu1 %v2128_v10  ;;  %1685 = vmatprep.mubr.msk.bf16.mxu1 %vm2129_vm1, %v2128_v10  ;;  %s2131_s23 = smov 64   ;;  %vm356_vm2 = vcmask 64512   ;;  %vm404_vm3 = vcmask 130048   ;;  %s2132_s7 = smov 120   ;;  %vm605_vm4 = vcmask 130112   ;;  %vm737_vm5 = vcmask 195712  }
  0x6f   : > { %s2133_s8 = smov 104   ;;  %s2134_s30 = smov 48   ;;  %vm869_vm6 = vcmask 261312   ;;  %vm1001_vm7 = vcmask 326912   ;;  %vm1133_vm8 = vcmask 392512   ;;  %vm1265_vm9 = vcmask 458112  }
  0x70   : > { %308 = vmatpush1.bf16.msra.mxu0 %v1886_v4  ;;  %s2135_s6 = smov 80   ;;  %s2136_s25 = smov 112   ;;  %vm1397_vm10 = vcmask 523712  }
  0x71   : > { %309 = vmatprep.subr.bf16.mxu0 %v1887_v5  ;;  %s2137_s9 = smov 72   ;;  %s2138_s27 = smov 40  }
  0x72   : > { %s2139_s20 = smov 32   ;;  %s2140_s29 = smov 96  }
  0x73   : > { %s2141_s5 = smov 24   ;;  %s2142_s12 = smov 88  }
  0x74   : > { %310 = vmatpush1.bf16.msra.mxu0 %v1889_v6  ;;  %s2143_s13 = smov 16   ;;  %s2144_s24 = smov 8  }
  0x75   : > { %311 = vmatprep.subr.bf16.mxu0 %v1890_v7  ;;  %s1606_s28 = sshll.u32 %s2350_s10, 4  ;;  %p2680_p0 = scmp.ne.s32.totalorder %s2675_s26, 0 }
  0x78   : > { %312 = vmatpush1.bf16.msra.mxu0 %v1892_v8 }
  0x79   : > { %1707 = vmatprep.subr.bf16.mxu0 %v2128_v10 }
  0x7b   : > { %1616 = vmatmul.mubr.msk.bf16.vlgmr.msra.gmra.mrb[0].mxu0 %vm301_vm0, %v1893_v9 }
  0x7c   : > { %1709 = vmatprep.mubr.msk.bf16.mxu0 %vm2129_vm1, %v2128_v10 }
 0x14e   : > { %v339_v11 = vpop.f32.mrb[0].mxu0 }
 0x14f   : > { %v341_v12 = vpop.f32.mrb[1].mxu0  ;;  %v348_v14 = vmul.f32 0.35355338, %v339_v11 }
 0x150   : > { %v343_v13 = vpop.f32.mrb[2].mxu0 }
 0x151   : > { %v349_v15 = vmul.f32 0.35355338, %v343_v13  ;;  %v351_v16 = vpack.c.bf16 %v343_v13, %v339_v11  ;;  %v345_v17 = vpop.f32.mrb[3].mxu0 }
 0x152   : > { %v2369_v18 = vpack.c.bf16 %v345_v17, %v341_v12 }
 0x153   : > { %v350_v19 = vpack.c.bf16 %v349_v15, %v348_v14  ;;  %477 = vrot.lane.b32.xlu1 %v351_v16, %s2130_s21  ;;  %354 = vrot.lane.b32.xlu0 %v351_v16, %s2131_s23 }
 0x1c5   : > { %v355_v20 = vpop.permute.xlu0 %354  ;;  %v478_v28 = vpop.permute.xlu1 %477 }
 0x1c6   : > { %v361_v21 = vsel %vm356_vm2, %v355_v20, 0  ;;  %v483_v44 = vsel %vm356_vm2, %v478_v28, 0 }
 0x1c7   : > { %1684 = vmatpush3.bf16.xpose.msra.mxu1 %v361_v21 }
 0x1c8   : > { %1689 = vmatprep.subr.bf16.mxu1 %v2128_v10 }
 0x1ce   : > { %1686 = vmatmul.mubr.msk.bf16.vlgmr.msra.gmra.mrb[0].mxu1 %vm356_vm2, %v350_v19 }
 0x1cf   : > { %1690 = vmatpush3.bf16.msra.mxu1 %v2369_v18  ;;  %1691 = vmatprep.mubr.msk.bf16.mxu1 %vm2129_vm1, %v2128_v10 }
 0x1d0   : > { %1695 = vmatprep.subr.bf16.mxu1 %v2128_v10 }
 0x2a1   : > { %v397_v22 = vpop.f32.mrb[0].mxu1 }
 0x2a2   : > { %v1687_v23 = vpop.f32.mrb[1].mxu1  ;;  %v405_v24 = vsel %vm404_vm3, %v397_v22, -inf }
 0x2a3   : > { %406 = vmax.xlane.f32.xlu0 %v405_v24  ;;  %v400_v25 = vpop.f32.mrb[2].mxu1 }
 0x2a4   : > { %v1688_v26 = vpop.f32.mrb[3].mxu1  ;;  %v408_v27 = vsel %vm404_vm3, %v400_v25, -inf }
 0x2a5   : > { %409 = vmax.xlane.f32.xlu1 %v408_v27 }
 0x2b6   : > { %475 = vrot.lane.b32.xlu1 %v350_v19, %s2132_s7 }
 0x2b9   : > { %740 = vrot.lane.b32.xlu0 %v350_v19, %s2133_s8 }
 0x2ba   : > { %610 = vrot.lane.b32.xlu1 %v351_v16, %s2134_s30 }
 0x2bd   : > { %1136 = vrot.lane.b32.xlu0 %v350_v19, %s2135_s6 }
 0x2be   : > { %608 = vrot.lane.b32.xlu1 %v350_v19, %s2136_s25 }
 0x2c1   : > { %1268 = vrot.lane.b32.xlu0 %v350_v19, %s2137_s9 }
 0x2c2   : > { %742 = vrot.lane.b32.xlu1 %v351_v16, %s2138_s27 }
 0x2c6   : > { %874 = vrot.lane.b32.xlu1 %v351_v16, %s2139_s20 }
 0x2ca   : > { %872 = vrot.lane.b32.xlu1 %v350_v19, %s2140_s29 }
 0x2ce   : > { %1006 = vrot.lane.b32.xlu1 %v351_v16, %s2141_s5 }
 0x2d2   : > { %1004 = vrot.lane.b32.xlu1 %v350_v19, %s2142_s12 }
 0x2d6   : > { %1138 = vrot.lane.b32.xlu1 %v351_v16, %s2143_s13 }
 0x2da   : > { %1270 = vrot.lane.b32.xlu1 %v351_v16, %s2144_s24 }
 0x330   : > { %v407_v29 = vpop.xlane.xlu0 %406 }
 0x331   : > { %v411_v30 = vsub.f32 %v397_v22, %v407_v29 }
 0x332   : > { %v410_v31 = vpop.xlane.xlu1 %409 }
 0x333   : > { %v413_v32 = vmul.f32 1.442695, %v411_v30  ;;  %v412_v33 = vsub.f32 %v400_v25, %v410_v31 }
 0x334   : > { %v741_v46 = vpop.permute.xlu0 %740 }
 0x335   : > { %v415_v34 = vmul.f32 1.442695, %v412_v33  ;;  %1898 = vpow2.f32 %v413_v32 }
 0x336   : > { %v476_v35 = vpop.permute.xlu1 %475 }
 0x337   : > { %1900 = vpow2.f32 %v415_v34 }
 0x338   : > { %v1137_v55 = vpop.permute.xlu0 %1136 }
 0x33a   : > { %v611_v36 = vpop.permute.xlu1 %610 }
 0x33b   : > { %v616_v37 = vsel %vm356_vm2, %v611_v36, 0 }
 0x33c   : > { %1708 = vmatpush3.bf16.xpose.msra.mxu0 %v616_v37  ;;  %v1269_v57 = vpop.permute.xlu0 %1268 }
 0x33d   : > { %1719 = vmatprep.subr.bf16.mxu0 %v2128_v10 }
 0x33e   : > { %v609_v38 = vpop.permute.xlu1 %608 }
 0x33f   : > { %v2396_v39 = vpop.eup %1898 }
 0x341   : > { %v2398_v40 = vpop.eup %1900 }
 0x342   : > { %v743_v41 = vpop.permute.xlu1 %742  ;;  %v423_v42 = vpack.c.bf16 %v2398_v40, %v2396_v39 }
 0x343   : > { %v748_v43 = vsel %vm356_vm2, %v743_v41, 0  ;;  %1710 = vmatmul.mubr.msk.bf16.vlgmr.msra.gmra.mrb[4].mxu0 %vm356_vm2, %v609_v38 }
 0x344   : > { %1692 = vmatmul.mubr.msk.bf16.vlgmr.msra.gmra.mrb[4].mxu1 %vm404_vm3, %v423_v42  ;;  %1720 = vmatpush3.bf16.xpose.msra.mxu0 %v748_v43 }
 0x345   : > { %1696 = vmatpush3.bf16.xpose.msra.mxu1 %v483_v44  ;;  %1721 = vmatprep.mubr.msk.bf16.mxu0 %vm2129_vm1, %v2128_v10 }
 0x346   : > { %v875_v45 = vpop.permute.xlu1 %874  ;;  %1697 = vmatprep.mubr.msk.bf16.mxu1 %vm2129_vm1, %v2128_v10  ;;  %1731 = vmatprep.subr.bf16.mxu0 %v2128_v10 }
 0x347   : > { %1701 = vmatprep.subr.bf16.mxu1 %v2128_v10  ;;  %v880_v48 = vsel %vm356_vm2, %v875_v45, 0 }
 0x34a   : > { %v873_v47 = vpop.permute.xlu1 %872 }
 0x34b   : > { %1722 = vmatmul.mubr.msk.bf16.vlgmr.msra.gmra.mrb[8].mxu0 %vm356_vm2, %v741_v46 }
 0x34c   : > { %1698 = vmatmul.mubr.msk.bf16.vlgmr.msra.gmra.mrb[8].mxu1 %vm356_vm2, %v476_v35  ;;  %1732 = vmatpush3.bf16.xpose.msra.mxu0 %v880_v48 }
 0x34d   : > { %1733 = vmatprep.mubr.msk.bf16.mxu0 %vm2129_vm1, %v2128_v10  ;;  %1743 = vmatprep.subr.bf16.mxu0 %v2128_v10 }
 0x34e   : > { %v1007_v49 = vpop.permute.xlu1 %1006  ;;  %1703 = vmatprep.mubr.msk.bf16.mxu1 %vm2129_vm1, %v2128_v10 }
 0x34f   : > { %v1012_v51 = vsel %vm356_vm2, %v1007_v49, 0 }
 0x352   : > { %v1005_v50 = vpop.permute.xlu1 %1004 }
 0x353   : > { %1734 = vmatmul.mubr.msk.bf16.vlgmr.msra.gmra.mrb[12].mxu0 %vm356_vm2, %v873_v47 }
 0x354   : > { %1744 = vmatpush3.bf16.xpose.msra.mxu0 %v1012_v51  ;;  %1745 = vmatprep.mubr.msk.bf16.mxu0 %vm2129_vm1, %v2128_v10 }
 0x355   : > { %1755 = vmatprep.subr.bf16.mxu0 %v2128_v10 }
 0x356   : > { %v1139_v52 = vpop.permute.xlu1 %1138 }
 0x357   : > { %v1144_v53 = vsel %vm356_vm2, %v1139_v52, 0 }
 0x35a   : > { %v1271_v54 = vpop.permute.xlu1 %1270 }
 0x35b   : > { %1746 = vmatmul.mubr.msk.bf16.vlgmr.msra.gmra.mrb[16].mxu0 %vm356_vm2, %v1005_v50  ;;  %v1276_v56 = vsel %vm356_vm2, %v1271_v54, 0 }
 0x35c   : > { %1756 = vmatpush3.bf16.xpose.msra.mxu0 %v1144_v53  ;;  %1757 = vmatprep.mubr.msk.bf16.mxu0 %vm2129_vm1, %v2128_v10 }
 0x35d   : > { %1767 = vmatprep.subr.bf16.mxu0 %v2128_v10 }
 0x363   : > { %1758 = vmatmul.mubr.msk.bf16.vlgmr.msra.gmra.mrb[20].mxu0 %vm356_vm2, %v1137_v55 }
 0x364   : > { %1768 = vmatpush3.bf16.xpose.msra.mxu0 %v1276_v56  ;;  %1769 = vmatprep.mubr.msk.bf16.mxu0 %vm2129_vm1, %v2128_v10 }
 0x365   : > { %1779 = vmatprep.subr.bf16.mxu0 %v2128_v10 }
 0x36b   : > { %1770 = vmatmul.mubr.msk.bf16.vlgmr.msra.gmra.mrb[24].mxu0 %vm356_vm2, %v1269_v57 }
 0x36c   : > { %1787 = vmatprep.mubr.msk.bf16.mxu0 %vm2129_vm1, %v2128_v10 }
 0x416   : > { %v2438_v58 = vpop.f32.mrb[4].mxu0 }
 0x417   : > { %v2440_v59 = vpop.f32.mrb[4].mxu1  ;;  %v1711_v60 = vpop.f32.mrb[5].mxu0  ;;  %v659_v61 = vsel %vm404_vm3, %v2438_v58, -inf }
 0x418   : > { %660 = vmax.xlane.f32.xlu0 %v659_v61  ;;  %v1693_v62 = vpop.f32.mrb[5].mxu1  ;;  %v2444_v63 = vpop.f32.mrb[6].mxu0 }
 0x419   : > { %v2446_v0 = vpop.f32.mrb[6].mxu1  ;;  %v1712_v1 = vpop.f32.mrb[7].mxu0  ;;  %v662_v2 = vsel %vm404_vm3, %v2444_v63, -inf }
 0x41a   : > { %663 = vmax.xlane.f32.xlu1 %v662_v2  ;;  %v1694_v3 = vpop.f32.mrb[7].mxu1 }
 0x41e   : > { %v2450_v4 = vpop.f32.mrb[8].mxu0 }
 0x41f   : > { %v2452_v5 = vpop.f32.mrb[8].mxu1  ;;  %v1723_v6 = vpop.f32.mrb[9].mxu0  ;;  %v791_v7 = vsel %vm404_vm3, %v2450_v4, -inf }
 0x420   : > { %792 = vmax.xlane.f32.xlu0 %v791_v7  ;;  %v1699_v8 = vpop.f32.mrb[9].mxu1  ;;  %v2456_v9 = vpop.f32.mrb[10].mxu0  ;;  %v526_v23 = vsel %vm404_vm3, %v2452_v5, -inf }
 0x421   : > { %v2458_v11 = vpop.f32.mrb[10].mxu1  ;;  %v1724_v12 = vpop.f32.mrb[11].mxu0  ;;  %v794_v13 = vsel %vm404_vm3, %v2456_v9, -inf }
 0x422   : > { %795 = vmax.xlane.f32.xlu1 %v794_v13  ;;  %v1700_v14 = vpop.f32.mrb[11].mxu1  ;;  %v529_v22 = vsel %vm404_vm3, %v2458_v11, -inf }
 0x426   : > { %v2462_v15 = vpop.f32.mrb[12].mxu0 }
 0x427   : > { %v1735_v16 = vpop.f32.mrb[13].mxu0  ;;  %v923_v17 = vsel %vm404_vm3, %v2462_v15, -inf }
 0x428   : > { %924 = vmax.xlane.f32.xlu0 %v923_v17  ;;  %v2466_v19 = vpop.f32.mrb[14].mxu0 }
 0x429   : > { %v1736_v20 = vpop.f32.mrb[15].mxu0  ;;  %v926_v21 = vsel %vm404_vm3, %v2466_v19, -inf }
 0x42a   : > { %927 = vmax.xlane.f32.xlu1 %v926_v21 }
 0x42c   : > { %530 = vmax.xlane.f32.xlu0 %v529_v22 }
 0x42e   : > { %v2474_v24 = vpop.f32.mrb[16].mxu0  ;;  %527 = vmax.xlane.f32.xlu1 %v526_v23 }
 0x42f   : > { %v1747_v25 = vpop.f32.mrb[17].mxu0  ;;  %v1055_v28 = vsel %vm404_vm3, %v2474_v24, -inf }
 0x430   : > { %v2476_v26 = vpop.f32.mrb[18].mxu0 }
 0x431   : > { %v1748_v27 = vpop.f32.mrb[19].mxu0  ;;  %v1058_v29 = vsel %vm404_vm3, %v2476_v26, -inf }
 0x432   : > { %1056 = vmax.xlane.f32.xlu1 %v1055_v28 }
 0x436   : > { %v2482_v30 = vpop.f32.mrb[20].mxu0  ;;  %1059 = vmax.xlane.f32.xlu1 %v1058_v29 }
 0x437   : > { %v1759_v31 = vpop.f32.mrb[21].mxu0  ;;  %v1187_v38 = vsel %vm404_vm3, %v2482_v30, -inf }
 0x438   : > { %v2484_v32 = vpop.f32.mrb[22].mxu0 }
 0x439   : > { %v1760_v33 = vpop.f32.mrb[23].mxu0  ;;  %v1190_v41 = vsel %vm404_vm3, %v2484_v32, -inf }
 0x43e   : > { %v2486_v34 = vpop.f32.mrb[24].mxu0 }
 0x43f   : > { %v1771_v35 = vpop.f32.mrb[25].mxu0  ;;  %v1319_v42 = vsel %vm404_vm3, %v2486_v34, -inf }
 0x440   : > { %v2488_v36 = vpop.f32.mrb[26].mxu0 }
 0x441   : > { %v1772_v37 = vpop.f32.mrb[27].mxu0  ;;  %v1322_v43 = vsel %vm404_vm3, %v2488_v36, -inf }
 0x442   : > { %546 = vrot.lane.b32.xlu0 %v2369_v18, %s2132_s7  ;;  %s244_s7 = scalar_lea.vmem [#allocation9], %s1606_s28 }
 0x447   : > { %678 = vrot.lane.b32.xlu1 %v2369_v18, %s2136_s25 }
 0x461   : > { %1188 = vmax.xlane.f32.xlu0 %v1187_v38 }
 0x46b   : > { %1191 = vmax.xlane.f32.xlu1 %v1190_v41 }
 0x46f   : > { %1320 = vmax.xlane.f32.xlu1 %v1319_v42 }
 0x473   : > { %1323 = vmax.xlane.f32.xlu1 %v1322_v43 }
 0x477   : > { %810 = vrot.lane.b32.xlu0 %v2369_v18, %s2133_s8  ;;  %s1502_s8 = sshll.u32 %s244_s7, 4  ;;  %s2610_s8 = int_to_ptr.vmem [resolvable:$true] %s1502_s8 }
 0x47b   : > { %1074 = vrot.lane.b32.xlu0 %v2369_v18, %s2142_s12 }
 0x47f   : > { %1206 = vrot.lane.b32.xlu0 %v2369_v18, %s2135_s6 }
 0x483   : > { %1338 = vrot.lane.b32.xlu0 %v2369_v18, %s2137_s9 }
 0x484   : > { %942 = vrot.lane.b32.xlu1 %v2369_v18, %s2140_s29 }
 0x4a5   : > { %v661_v44 = vpop.xlane.xlu0 %660 }
 0x4a6   : > { %v665_v45 = vsub.f32 %v2438_v58, %v661_v44 }
 0x4a7   : > { %v664_v46 = vpop.xlane.xlu1 %663 }
 0x4a8   : > { %v667_v47 = vmul.f32 1.442695, %v665_v45  ;;  %v666_v48 = vsub.f32 %v2444_v63, %v664_v46 }
 0x4aa   : > { %1902 = vpow2.f32 %v667_v47  ;;  %v669_v49 = vmul.f32 1.442695, %v666_v48 }
 0x4ac   : > { %1904 = vpow2.f32 %v669_v49 }
 0x4ad   : > { %v793_v50 = vpop.xlane.xlu0 %792 }
 0x4ae   : > { %v797_v51 = vsub.f32 %v2450_v4, %v793_v50 }
 0x4af   : > { %v796_v52 = vpop.xlane.xlu1 %795 }
 0x4b0   : > { %v799_v53 = vmul.f32 1.442695, %v797_v51  ;;  %v798_v54 = vsub.f32 %v2456_v9, %v796_v52 }
 0x4b2   : > { %1906 = vpow2.f32 %v799_v53  ;;  %v801_v55 = vmul.f32 1.442695, %v798_v54 }
 0x4b4   : > { %v2516_v18 = vpop.eup %1902  ;;  %1908 = vpow2.f32 %v801_v55 }
 0x4b5   : > { %v925_v56 = vpop.xlane.xlu0 %924  ;;  %v671_v57 = vsel %vm404_vm3, %v2516_v18, 0.0 }
 0x4b6   : > { %v2520_v58 = vpop.eup %1904  ;;  %v929_v60 = vsub.f32 %v2462_v15, %v925_v56  ;;  %672 = vadd.xlane.f32.xlu0 %v671_v57 }
 0x4b7   : > { %v928_v61 = vpop.xlane.xlu1 %927  ;;  %v677_v62 = vpack.c.bf16 %v2520_v58, %v2516_v18  ;;  %v674_v3 = vsel %vm404_vm3, %v2520_v58, 0.0 }
 0x4b8   : > { %v931_v63 = vmul.f32 1.442695, %v929_v60  ;;  %v930_v1 = vsub.f32 %v2466_v19, %v928_v61 }
 0x4b9   : > { %v531_v2 = vpop.xlane.xlu0 %530 }
 0x4ba   : > { %1910 = vpow2.f32 %v931_v63  ;;  %v933_v4 = vmul.f32 1.442695, %v930_v1  ;;  %v533_v6 = vsub.f32 %v2458_v11, %v531_v2  ;;  %675 = vadd.xlane.f32.xlu0 %v674_v3 }
 0x4bb   : > { %v528_v7 = vpop.xlane.xlu1 %527 }
 0x4bc   : > { %v1907_v8 = vpop.eup %1906  ;;  %1912 = vpow2.f32 %v933_v4  ;;  %v536_v9 = vmul.f32 1.442695, %v533_v6  ;;  %v532_v12 = vsub.f32 %v2452_v5, %v528_v7  ;;  %v417_v6 = vsel %vm404_vm3, %v2396_v39, 0.0 }
 0x4bd   : > { %v547_v13 = vpop.permute.xlu0 %546  ;;  %v803_v14 = vsel %vm404_vm3, %v1907_v8, 0.0  ;;  %v420_v7 = vsel %vm404_vm3, %v2398_v40, 0.0 }
 0x4be   : > { %v1909_v15 = vpop.eup %1908  ;;  %v534_v16 = vmul.f32 1.442695, %v532_v12  ;;  %804 = vadd.xlane.f32.xlu1 %v803_v14  ;;  %1702 = vmatpush3.bf16.msra.mxu1 %v547_v13  ;;  %1914 = vpow2.f32 %v536_v9 }
 0x4bf   : > { %v1057_v17 = vpop.xlane.xlu1 %1056  ;;  %v806_v19 = vsel %vm404_vm3, %v1909_v15, 0.0  ;;  %1713 = vmatprep.subr.bf16.mxu1 %v2128_v10  ;;  %v809_v11 = vpack.c.bf16 %v1909_v15, %v1907_v8 }
 0x4c0   : > { %1916 = vpow2.f32 %v534_v16  ;;  %v1061_v20 = vsub.f32 %v2474_v24, %v1057_v17  ;;  %807 = vadd.xlane.f32.xlu0 %v806_v19 }
 0x4c2   : > { %v1063_v21 = vmul.f32 1.442695, %v1061_v20 }
 0x4c3   : > { %v1060_v5 = vpop.xlane.xlu1 %1059 }
 0x4c4   : > { %v1911_v22 = vpop.eup %1910  ;;  %1918 = vpow2.f32 %v1063_v21  ;;  %v1062_v23 = vsub.f32 %v2476_v26, %v1060_v5 }
 0x4c5   : > { %v935_v25 = vsel %vm404_vm3, %v1911_v22, 0.0 }
 0x4c6   : > { %v1913_v27 = vpop.eup %1912  ;;  %v1065_v28 = vmul.f32 1.442695, %v1062_v23  ;;  %936 = vadd.xlane.f32.xlu1 %v935_v25 }
 0x4c7   : > { %v938_v29 = vsel %vm404_vm3, %v1913_v27, 0.0  ;;  %v941_v31 = vpack.c.bf16 %v1913_v27, %v1911_v22  ;;  %v679_v37 = vpop.permute.xlu1 %678 }
 0x4c8   : > { %1920 = vpow2.f32 %v1065_v28  ;;  %939 = vadd.xlane.f32.xlu0 %v938_v29  ;;  %v1915_v33 = vpop.eup %1914 }
 0x4c9   : > { %v541_v43 = vsel %vm404_vm3, %v1915_v33, 0.0 }
 0x4ca   : > { %v1917_v35 = vpop.eup %1916 }
 0x4cb   : > { %v544_v24 = vpack.c.bf16 %v1915_v33, %v1917_v35  ;;  %v538_v45 = vsel %vm404_vm3, %v1917_v35, 0.0 }
 0x4cd   : > { %1704 = vmatmul.mubr.msk.bf16.vlgmr.msra.gmra.mrb[12].mxu1 %vm404_vm3, %v544_v24 }
 0x4ce   : > { %v1919_v38 = vpop.eup %1918  ;;  %1714 = vmatpush3.bf16.msra.mxu1 %v679_v37  ;;  %1715 = vmatprep.mubr.msk.bf16.mxu1 %vm2129_vm1, %v2128_v10 }
 0x4cf   : > { %v1067_v26 = vsel %vm404_vm3, %v1919_v38, 0.0  ;;  %1725 = vmatprep.subr.bf16.mxu1 %v2128_v10 }
 0x4d0   : > { %1068 = vadd.xlane.f32.xlu1 %v1067_v26 }
 0x4d2   : > { %v1921_v41 = vpop.eup %1920 }
 0x4d3   : > { %v1070_v42 = vsel %vm404_vm3, %v1921_v41, 0.0  ;;  %v1073_v44 = vpack.c.bf16 %v1921_v41, %v1919_v38 }
 0x4d4   : > { %1071 = vadd.xlane.f32.xlu0 %v1070_v42  ;;  %542 = vadd.xlane.f32.xlu1 %v541_v43 }
 0x4d5   : > { %1716 = vmatmul.mubr.msk.bf16.vlgmr.msra.gmra.mrb[16].mxu1 %vm404_vm3, %v677_v62 }
 0x4d6   : > { %1727 = vmatprep.mubr.msk.bf16.mxu1 %vm2129_vm1, %v2128_v10 }
 0x4d8   : > { %539 = vadd.xlane.f32.xlu0 %v538_v45 }
 0x4ee   : > { %v1189_v46 = vpop.xlane.xlu0 %1188 }
 0x4ef   : > { %v1193_v47 = vsub.f32 %v2482_v30, %v1189_v46 }
 0x4f1   : > { %v1195_v48 = vmul.f32 1.442695, %v1193_v47 }
 0x4f2   : > { %v811_v49 = vpop.permute.xlu0 %810 }
 0x4f3   : > { %1922 = vpow2.f32 %v1195_v48  ;;  %1726 = vmatpush3.bf16.msra.mxu1 %v811_v49 }
 0x4f4   : > { %1737 = vmatprep.subr.bf16.mxu1 %v2128_v10 }
 0x4f6   : > { %1728 = vmatmul.mubr.msk.bf16.vlgmr.msra.gmra.mrb[20].mxu1 %vm404_vm3, %v809_v11  ;;  %v1075_v61 = vpop.permute.xlu0 %1074 }
 0x4f7   : > { %1739 = vmatprep.mubr.msk.bf16.mxu1 %vm2129_vm1, %v2128_v10 }
 0x4f8   : > { %v1192_v50 = vpop.xlane.xlu1 %1191 }
 0x4f9   : > { %v1194_v51 = vsub.f32 %v2484_v32, %v1192_v50 }
 0x4fa   : > { %v1207_v2 = vpop.permute.xlu0 %1206 }
 0x4fb   : > { %v1197_v52 = vmul.f32 1.442695, %v1194_v51 }
 0x4fc   : > { %v1321_v53 = vpop.xlane.xlu1 %1320 }
 0x4fd   : > { %v1923_v54 = vpop.eup %1922  ;;  %1924 = vpow2.f32 %v1197_v52  ;;  %v1325_v30 = vsub.f32 %v2486_v34, %v1321_v53 }
 0x4fe   : > { %v1199_v55 = vsel %vm404_vm3, %v1923_v54, 0.0  ;;  %v1339_v8 = vpop.permute.xlu0 %1338 }
 0x4ff   : > { %v1327_v18 = vmul.f32 1.442695, %v1325_v30  ;;  %1200 = vadd.xlane.f32.xlu1 %v1199_v55 }
 0x500   : > { %v1324_v56 = vpop.xlane.xlu1 %1323 }
 0x501   : > { %1926 = vpow2.f32 %v1327_v18  ;;  %v1326_v57 = vsub.f32 %v2488_v36, %v1324_v56 }
 0x503   : > { %v1329_v58 = vmul.f32 1.442695, %v1326_v57 }
 0x504   : > { %v943_v60 = vpop.permute.xlu1 %942 }
 0x505   : > { %1928 = vpow2.f32 %v1329_v58  ;;  %1738 = vmatpush3.bf16.msra.mxu1 %v943_v60 }
 0x506   : > { %1749 = vmatprep.subr.bf16.mxu1 %v2128_v10 }
 0x507   : > { %v1925_v32 = vpop.eup %1924 }
 0x508   : > { %1740 = vmatmul.mubr.msk.bf16.vlgmr.msra.gmra.mrb[24].mxu1 %vm404_vm3, %v941_v31  ;;  %v1202_v34 = vsel %vm404_vm3, %v1925_v32, 0.0  ;;  %v1205_v62 = vpack.c.bf16 %v1925_v32, %v1923_v54 }
 0x509   : > { %1203 = vadd.xlane.f32.xlu0 %v1202_v34  ;;  %1750 = vmatpush3.bf16.msra.mxu1 %v1075_v61 }
 0x50a   : > { %1751 = vmatprep.mubr.msk.bf16.mxu1 %vm2129_vm1, %v2128_v10  ;;  %1761 = vmatprep.subr.bf16.mxu1 %v2128_v10 }
 0x50b   : > { %v1927_v36 = vpop.eup %1926 }
 0x50c   : > { %v1331_v63 = vsel %vm404_vm3, %v1927_v36, 0.0 }
 0x50d   : > { %1332 = vadd.xlane.f32.xlu1 %v1331_v63 }
 0x50f   : > { %v1929_v1 = vpop.eup %1928 }
 0x510   : > { %1752 = vmatmul.mubr.msk.bf16.vlgmr.msra.gmra.mrb[28].mxu1 %vm404_vm3, %v1073_v44  ;;  %v1334_v3 = vsel %vm404_vm3, %v1929_v1, 0.0  ;;  %v1337_v4 = vpack.c.bf16 %v1929_v1, %v1927_v36  ;;  %v1894_v36 = vld [vmem:[#allocation8] sm:$0xff]  }
 0x511   : > { %1762 = vmatpush3.bf16.msra.mxu1 %v1207_v2  ;;  %1335 = vadd.xlane.f32.xlu0 %v1334_v3 }
 0x512   : > { %418 = vadd.xlane.f32.xlu1 %v417_v6  ;;  %1763 = vmatprep.mubr.msk.bf16.mxu1 %vm2129_vm1, %v2128_v10 }
 0x513   : > { %1773 = vmatprep.subr.bf16.mxu1 %v2128_v10  ;;  %1780 = vmatpush3.bf16.msra.mxu0 %v1894_v36 }
 0x514   : > { %1781 = vmatprep.subr.bf16.mxu0 %v2128_v10 }
 0x515   : > { %421 = vadd.xlane.f32.xlu0 %v420_v7  ;;  %v1895_v7 = vld [vmem:[#allocation8 + $0x8] sm:$0xff]  }
 0x517   : > { %1782 = vmatpush3.bf16.msra.mxu0 %v1895_v7 }
 0x518   : > { %1764 = vmatmul.mubr.msk.bf16.vlgmr.msra.gmra.mrb[32].mxu1 %vm404_vm3, %v1205_v62  ;;  %1783 = vmatprep.subr.bf16.mxu0 %v2128_v10 }
 0x519   : > { %1774 = vmatpush3.bf16.msra.mxu1 %v1339_v8  ;;  %1775 = vmatprep.mubr.msk.bf16.mxu1 %vm2129_vm1, %v2128_v10 }
 0x520   : > { %1776 = vmatmul.mubr.msk.bf16.vlgmr.msra.gmra.mrb[36].mxu1 %vm404_vm3, %v1337_v4 }
 0x543   : > { %v673_v39 = vpop.xlane.xlu0 %672 }
 0x547   : > { %v676_v9 = vpop.xlane.xlu0 %675 }
 0x54b   : > { %v805_v12 = vpop.xlane.xlu1 %804 }
 0x54d   : > { %v808_v13 = vpop.xlane.xlu0 %807 }
 0x553   : > { %v937_v14 = vpop.xlane.xlu1 %936 }
 0x555   : > { %v940_v15 = vpop.xlane.xlu0 %939 }
 0x55d   : > { %v1069_v16 = vpop.xlane.xlu1 %1068 }
 0x561   : > { %v1072_v17 = vpop.xlane.xlu0 %1071  ;;  %v543_v19 = vpop.xlane.xlu1 %542 }
 0x565   : > { %v540_v40 = vpop.xlane.xlu0 %539 }
 0x566   : > { %1930 = vrcp.f32 %v540_v40 }
 0x567   : > { %1932 = vrcp.f32 %v543_v19  ;;  %v1897_v19 = vld [vmem:[#allocation8 + $0x18] sm:$0xff]  }
 0x568   : > { %1934 = vrcp.f32 %v673_v39 }
 0x570   : > { %v1931_v23 = vpop.eup %1930 }
 0x571   : > { %v1933_v29 = vpop.eup %1932 }
 0x572   : > { %v1935_v37 = vpop.eup %1934 }
 0x58c   : > { %v1201_v11 = vpop.xlane.xlu1 %1200 }
 0x596   : > { %v1204_v20 = vpop.xlane.xlu0 %1203 }
 0x59a   : > { %v2577_v21 = vpop.xlane.xlu1 %1332 }
 0x59e   : > { %v2579_v5 = vpop.xlane.xlu0 %1335 }
 0x59f   : > { %v419_v22 = vpop.xlane.xlu1 %418 }
 0x5a0   : > { %1936 = vrcp.f32 %v419_v22  ;;  %v586_v25 = vpop.f32.mrb[12].mxu1 }
 0x5a1   : > { %v595_v27 = vmul.f32 %v1931_v23, %v586_v25  ;;  %v1705_v28 = vpop.f32.mrb[13].mxu1  ;;  %1938 = vrcp.f32 %v676_v9  ;;  %v1896_v9 = vld [vmem:[#allocation8 + $0x10] sm:$0xff]  }
 0x5a2   : > { %v422_v31 = vpop.xlane.xlu0 %421  ;;  %v589_v33 = vpop.f32.mrb[14].mxu1  ;;  %1784 = vmatpush3.bf16.msra.mxu0 %v1896_v9 }
 0x5a3   : > { %1940 = vrcp.f32 %v422_v31  ;;  %v596_v35 = vmul.f32 %v1933_v29, %v589_v33  ;;  %599 = vrot.lane.b32.xlu1 %v595_v27, %s2144_s24  ;;  %v1706_v24 = vpop.f32.mrb[15].mxu1  ;;  %1785 = vmatprep.subr.bf16.mxu0 %v2128_v10 }
 0x5a4   : > { %1942 = vrcp.f32 %v805_v12 }
 0x5a5   : > { %601 = vrot.lane.b32.xlu0 %v596_v35, %s2144_s24  ;;  %1944 = vrcp.f32 %v808_v13 }
 0x5a6   : > { %1946 = vrcp.f32 %v937_v14  ;;  %1786 = vmatpush3.bf16.msra.mxu0 %v1897_v19 }
 0x5a7   : > { %1948 = vrcp.f32 %v940_v15 }
 0x5a8   : > { %v718_v38 = vpop.f32.mrb[16].mxu1  ;;  %1950 = vrcp.f32 %v1069_v16 }
 0x5a9   : > { %v727_v26 = vmul.f32 %v1935_v37, %v718_v38  ;;  %v1717_v41 = vpop.f32.mrb[17].mxu1  ;;  %1952 = vrcp.f32 %v1072_v17 }
 0x5aa   : > { %v1937_v42 = vpop.eup %1936  ;;  %v721_v43 = vpop.f32.mrb[18].mxu1  ;;  %1954 = vrcp.f32 %v1201_v11 }
 0x5ab   : > { %v470_v44 = vmul.f32 %v1937_v42, %v2440_v59  ;;  %731 = vrot.lane.b32.xlu1 %v727_v26, %s2143_s13  ;;  %v1718_v45 = vpop.f32.mrb[19].mxu1  ;;  %v1939_v46 = vpop.eup %1938  ;;  %1956 = vrcp.f32 %v1204_v20 }
 0x5ac   : > { %v728_v48 = vmul.f32 %v1939_v46, %v721_v43  ;;  %1958 = vrcp.f32 %v2577_v21 }
 0x5ad   : > { %v1941_v47 = vpop.eup %1940  ;;  %472 = vst.msk [vmem:[#allocation2] sm:$0xff] %vm356_vm2, %v470_v44  ;;  %1960 = vrcp.f32 %v2579_v5 }
 0x5ae   : > { %v471_v49 = vmul.f32 %v1941_v47, %v2446_v0  ;;  %v1943_v50 = vpop.eup %1942  ;;  %v1633_v47 = vld [vmem:[%s2665_s3] ss:$0 sm:$0xff] }
 0x5af   : > { %733 = vrot.lane.b32.xlu1 %v728_v48, %s2143_s13  ;;  %v1945_v53 = vpop.eup %1944 }
 0x5b0   : > { %473 = vst.msk [vmem:[#allocation2 + $0x8] sm:$0xff] %vm356_vm2, %v471_v49  ;;  %v1947_v0 = vpop.eup %1946 }
 0x5b1   : > { %v1949_v58 = vpop.eup %1948 }
 0x5b2   : > { %v1951_v34 = vpop.eup %1950 }
 0x5b3   : > { %v1953_v2 = vpop.eup %1952 }
 0x5b4   : > { %v1955_v8 = vpop.eup %1954 }
 0x5b5   : > { %v1957_v14 = vpop.eup %1956 }
 0x5b6   : > { %v1959_v40 = vpop.eup %1958 }
 0x5b7   : > { %v1961_v5 = vpop.eup %1960 }
 0x5c9   : > { %v850_v51 = vpop.f32.mrb[20].mxu1 }
 0x5ca   : > { %v859_v52 = vmul.f32 %v1943_v50, %v850_v51  ;;  %v1729_v59 = vpop.f32.mrb[21].mxu1 }
 0x5cb   : > { %v853_v54 = vpop.f32.mrb[22].mxu1 }
 0x5cc   : > { %v860_v30 = vmul.f32 %v1945_v53, %v853_v54  ;;  %863 = vrot.lane.b32.xlu0 %v859_v52, %s2141_s5  ;;  %v1730_v55 = vpop.f32.mrb[23].mxu1 }
 0x5ce   : > { %865 = vrot.lane.b32.xlu1 %v860_v30, %s2141_s5 }
 0x5db   : > { %v982_v18 = vpop.f32.mrb[24].mxu1 }
 0x5dc   : > { %v991_v56 = vmul.f32 %v1947_v0, %v982_v18  ;;  %v1741_v57 = vpop.f32.mrb[25].mxu1 }
 0x5dd   : > { %v985_v60 = vpop.f32.mrb[26].mxu1 }
 0x5de   : > { %v992_v32 = vmul.f32 %v1949_v58, %v985_v60  ;;  %995 = vrot.lane.b32.xlu0 %v991_v56, %s2139_s20  ;;  %v1742_v61 = vpop.f32.mrb[27].mxu1 }
 0x5e0   : > { %997 = vrot.lane.b32.xlu1 %v992_v32, %s2139_s20  ;;  %s2145_s20 = smov [#allocation9]  }
 0x5e1   : > { %s2052_s29 = sshll.u32 %s2145_s20, 4  ;;  %s2053_s29 = int_to_ptr.vmem [resolvable:$false] %s2052_s29 }
 0x5e2   : > { %s2054_s5 = scalar_lea.vmem %s2053_s29, 512  ;;  %p2055_p5 = scmp.lt.s32.totalorder %s2610_s8, %s2053_s29 }
 0x5e3   : > { %v1114_v62 = vpop.f32.mrb[28].mxu1 }
 0x5e4   : > { %v1123_v63 = vmul.f32 %v1951_v34, %v1114_v62  ;;  %v1753_v1 = vpop.f32.mrb[29].mxu1 }
 0x5e5   : > { %v1117_v3 = vpop.f32.mrb[30].mxu1 }
 0x5e6   : > { %v1124_v4 = vmul.f32 %v1953_v2, %v1117_v3  ;;  %1127 = vrot.lane.b32.xlu0 %v1123_v63, %s2138_s27  ;;  %v1754_v6 = vpop.f32.mrb[31].mxu1 }
 0x5e8   : > { %1129 = vrot.lane.b32.xlu1 %v1124_v4, %s2138_s27  ;;  %s2048_s27 = scalar_lea.vmem %s2610_s8, 256 }
 0x5e9   : > { %p2049_p8 = scmp.ne.s32.totalorder %s2610_s8, %s2048_s27  ;;  %p2056_p9 = scmp.lt.s32.totalorder %s2054_s5, %s2048_s27 }
 0x5eb   : > { %v1246_v39 = vpop.f32.mrb[32].mxu1  ;;  %p2050_p1 = pnand %p2049_p8, %p2680_p0  ;;  %p2057_p12 = por %p2056_p9, %p2055_p5 }
 0x5ec   : > { %v1255_v12 = vmul.f32 %v1955_v8, %v1246_v39  ;;  %v1765_v13 = vpop.f32.mrb[33].mxu1 }
 0x5ed   : > { %v1249_v15 = vpop.f32.mrb[34].mxu1  ;;  %p2051_p3 = pneg %p2050_p1 }
 0x5ee   : > { %v1256_v16 = vmul.f32 %v1957_v14, %v1249_v15  ;;  %1259 = vrot.lane.b32.xlu0 %v1255_v12, %s2134_s30  ;;  %v1766_v17 = vpop.f32.mrb[35].mxu1 }
 0x5ef   : > { %p2058_p2 = pnand %p2057_p12, %p2051_p3 }
 0x5f0   : > { %1261 = vrot.lane.b32.xlu1 %v1256_v16, %s2134_s30  ;;  %s1645_s30 = sshll.u32 %s2193_s19, 8  ;;  %s1489_s19 = scalar_lea.sflag [#allocation5], %s2350_s10 }
 0x5f1   : > { %s2616_s9 = scalar_lea.hbm %s2666_s4, %s1645_s30 }
 0x5f3   : > { %v1378_v11 = vpop.f32.mrb[36].mxu1 }
 0x5f4   : > { %v1387_v20 = vmul.f32 %v1959_v40, %v1378_v11  ;;  %v1777_v21 = vpop.f32.mrb[37].mxu1 }
 0x5f5   : > { %v1381_v22 = vpop.f32.mrb[38].mxu1 }
 0x5f6   : > { %v1388_v23 = vmul.f32 %v1961_v5, %v1381_v22  ;;  %1391 = vrot.lane.b32.xlu0 %v1387_v20, %s2130_s21  ;;  %v1778_v25 = vpop.f32.mrb[39].mxu1 }
 0x5f8   : > { %1393 = vrot.lane.b32.xlu1 %v1388_v23, %s2130_s21 }
 0x615   : > { %v600_v27 = vpop.permute.xlu1 %599 }
 0x616   : > { %606 = vst.msk [vmem:[#allocation2] sm:$0xff] %vm605_vm4, %v600_v27 }
 0x617   : > { %v602_v28 = vpop.permute.xlu0 %601 }
 0x618   : > { %607 = vst.msk [vmem:[#allocation2 + $0x8] sm:$0xff] %vm605_vm4, %v602_v28 }
 0x61d   : > { %v732_v10 = vpop.permute.xlu1 %731 }
 0x61e   : > { %738 = vst.msk [vmem:[#allocation2] sm:$0xff] %vm737_vm5, %v732_v10 }
 0x621   : > { %v734_v29 = vpop.permute.xlu1 %733 }
 0x622   : > { %739 = vst.msk [vmem:[#allocation2 + $0x8] sm:$0xff] %vm737_vm5, %v734_v29 }
 0x63e   : > { %v864_v31 = vpop.permute.xlu0 %863 }
 0x63f   : > { %870 = vst.msk [vmem:[#allocation2] sm:$0xff] %vm869_vm6, %v864_v31 }
 0x640   : > { %v866_v33 = vpop.permute.xlu1 %865 }
 0x641   : > { %871 = vst.msk [vmem:[#allocation2 + $0x8] sm:$0xff] %vm869_vm6, %v866_v33 }
 0x650   : > { %v996_v35 = vpop.permute.xlu0 %995 }
 0x651   : > { %1002 = vst.msk [vmem:[#allocation2] sm:$0xff] %vm1001_vm7, %v996_v35 }
 0x652   : > { %v998_v24 = vpop.permute.xlu1 %997 }
 0x653   : > { %1003 = vst.msk [vmem:[#allocation2 + $0x8] sm:$0xff] %vm1001_vm7, %v998_v24 }
 0x658   : > { %v1128_v37 = vpop.permute.xlu0 %1127 }
 0x659   : > { %1134 = vst.msk [vmem:[#allocation2] sm:$0xff] %vm1133_vm8, %v1128_v37 }
 0x65a   : > { %v1130_v38 = vpop.permute.xlu1 %1129 }
 0x65b   : > { %1135 = vst.msk [vmem:[#allocation2 + $0x8] sm:$0xff] %vm1133_vm8, %v1130_v38 }
 0x660   : > { %v1260_v26 = vpop.permute.xlu0 %1259 }
 0x661   : > { %1266 = vst.msk [vmem:[#allocation2] sm:$0xff] %vm1265_vm9, %v1260_v26 }
 0x662   : > { %v1262_v41 = vpop.permute.xlu1 %1261 }
 0x663   : > { %1267 = vst.msk [vmem:[#allocation2 + $0x8] sm:$0xff] %vm1265_vm9, %v1262_v41 }
 0x668   : > { %v1392_v42 = vpop.permute.xlu0 %1391 }
 0x669   : > { %1398 = vst.msk [vmem:[#allocation2] sm:$0xff] %vm1397_vm10, %v1392_v42 }
 0x66a   : > { %v1394_v43 = vpop.permute.xlu1 %1393 }
 0x66b   : > { %1399 = vst.msk [vmem:[#allocation2 + $0x8] sm:$0xff] %vm1397_vm10, %v1394_v43 }
 0x670   : > { %v1400_v44 = vld [vmem:[#allocation2] sm:$0xff] }
 0x672   : > { %v1401_v45 = vld [vmem:[#allocation2 + $0x8] sm:$0xff] }
 0x673   : > { %v1402_v46 = vpack.c.bf16 %v1401_v45, %v1400_v44 }
 0x675   : > { %1788 = vmatmul.mubr.msk.bf16.vlgmr.msra.gmra.mrb[28].mxu0 %vm301_vm0, %v1402_v46 }
 0x748   : > { %v1479_v48 = vpop.f32.mrb[28].mxu0 }
 0x749   : > { %v1480_v49 = vadd.f32 %v1633_v47, %v1479_v48  ;;  %v1789_v50 = vpop.f32.mrb[29].mxu0 }
 0x74a   : > { %v1482_v51 = vpop.f32.mrb[30].mxu0 }
 0x74b   : > { %1486 = vst.msk [vmem:[%s244_s7] sm:$0xff] %vm301_vm0, %v1480_v49  ;;  %v1483_v52 = vadd.f32 %v1633_v47, %v1482_v51  ;;  %v1790_v59 = vpop.f32.mrb[31].mxu0 }
 0x74d   : > { %1487 = vst.msk [vmem:[%s244_s7 + $0x8] sm:$0xff] %vm301_vm0, %v1483_v52 }
 0x74e   : > { %2061 = shalt.err (!%p2058_p2)
}
 0x74f   : > { %s2062_s12 = scalar_lea.hbm %s2616_s9, 256  ;;  %s2066_s21 = scalar_lea.hbm %s2666_s4, 512 }
 0x750   : > { %p2063_p13 = scmp.ne.s32.totalorder %s2616_s9, %s2062_s12  ;;  %p2067_p4 = scmp.lt.u32.totalorder %s2616_s9, %s2666_s4 }
 0x751   : > { %p2068_p7 = scmp.lt.u32.totalorder %s2066_s21, %s2062_s12  ;;  %p2070_p8 = scmp.lt.u32.totalorder %s2062_s12, %s2616_s9 }
 0x752   : > { %p2064_p6 = pnand %p2063_p13, %p2680_p0 }
 0x753   : > { %p2069_p11 = por %p2068_p7, %p2067_p4 }
 0x754   : > { %p2065_p10 = pneg %p2064_p6 }
 0x755   : > { %p2071_p1 = por %p2070_p8, %p2069_p11 }
 0x757   : > { %p2072_p3 = pnand %p2071_p1, %p2065_p10 }
 0x759   : > { %2075 = shalt.err (!%p2072_p3)
}
 0x75a   : > { %s2146_s30 = smov 128  }
 0x75b   : > { %1801 = dma.vmem_to_hbm [thread:$0]  (%p2680_p0), %s2610_s8, 256, %s2616_s9, %s1489_s19, %s2146_s30, %s2146_s30, %s2144_s24  }
 0x75c PF: > { %s1517_s6 = sand.u32 1, %s2106_s15   ;;  %p2681_p5 = scmp.ne.s32.totalorder %s2671_s22, 0 }
 0x75d   : > { %p2682_p9 = scmp.ge.s32.totalorder %s2118_s18, 2  ;;  %s1518_s25 = scalar_lea.sflag [#allocation5], %s1517_s6 }
 0x75f   : > { %p1815_p12 = pnand %p2682_p9, %p2681_p5 }
 0x761   : > { %2101 = dma.done.wait (!%p1815_p12), %s1518_s25, 256  }
 0x762   : > { %2103 = vsyncadd (!%p1815_p12), %s1518_s25, 4294967040  ;;  %p18_p2 = scmp.ge.s32.totalorder %s2285_s11, 4   ;;  %s2683_s15 = smov %s2110_s16 }
 0x763   : > { %s2684_s16 = smov %s2114_s17  ;;  %s2685_s17 = smov %s2294_s14 }
 0x764   : > { %s2686_s18 = smov %s2285_s11  ;;  %20 = sbr.rel (!%p18_p2) target bundleno = 6 (0x6), region = 89 }
 0x76b   :  { %1523 = vsyncpa [#allocation4], 1 }
 0x76c   :  { %1525 = vsyncpa [#allocation4 + $0x1], 1 }
 0x76d   :  { %1526 = vsyncpa [#allocation7], 1 }
 0x76e   :  { %1527 = vsyncpa [#allocation5], 1 }
 0x76f   :  { %1529 = vsyncpa [#allocation5 + $0x1], 1 }

</bundles_post_ra>
